<compile_context>
chip_gen: v7x
topology: tpu7x:2x2x1
jax: 0.10.0
libtpu: 0.0.40
codegen_flags: <defaults>
</compile_context>

<pallas_src>
import functools

import jax
import jax.numpy as jnp
from jax.experimental import pallas as pl
from jax.experimental.pallas import tpu as pltpu

N_SIGMA = 2
_LANE = 128
_SUB = 8
_TILE = _LANE * _SUB          # pixels per full (8,128) f32 vreg tile


def _vmem_limit_bytes():
    # Generation-aware scoped-VMEM limit: physical capacity minus ~16 MiB headroom,
    # clamped to a sane range (64 MiB parts like v7x get 48 MiB, 128 MiB parts ~112).
    try:
        cap = pltpu.get_tpu_info().vmem_capacity_bytes
    except Exception:  # pragma: no cover - conservative fallback off-device
        cap = 64 * 1024 * 1024
    return int(max(32 * 1024 * 1024, min(cap - 16 * 1024 * 1024, 112 * 1024 * 1024)))


def _lane_row(values):
    """Scatter a few scalars into lanes 0..k-1 of a single (1, 128) f32 row."""
    lane = jax.lax.broadcasted_iota(jnp.int32, (1, _LANE), 1)
    out = jnp.zeros((1, _LANE), jnp.float32)
    for k, v in enumerate(values):
        out = jnp.where(lane == k, v, out)
    return out


# ----------------------------------------------------------------------------
# Fused Pallas kernel: activations (once per batch) + per-instance maps/stats
# ----------------------------------------------------------------------------
def _embed_track_kernel(ids_ref,                                   # SMEM prefetch
                        yxm_ref, seg_ref, off_ref, lab_ref, inst_ref,
                        cimg_ref, offs_ref,                        # inputs
                        dist_ref, dist_tr_ref, mask_ref, stats_ref, bg_ref,  # outputs
                        sp_sc, sig_sc, seed_sc, tr_sc,             # VMEM scratch
                        *, half_b):
    b = pl.program_id(0)          # batch ("parallel": whole batches per TensorCore)
    j = pl.program_id(1)          # instance slot ("arbitrary": sequential per batch)

    # ---- once per batch: activations -> VMEM scratch, background seed stats ----
    @pl.when(j == 0)
    def _():
        seg = seg_ref[...]                                         # (5, R, 128)
        sp_sc[...] = jnp.tanh(seg[0:2]) + yxm_ref[...]             # spatial_emb
        act = jax.nn.sigmoid(seg[2:2 + N_SIGMA + 1])               # sigma(2)+seed(1), one EUP pass
        sig_sc[...] = act[0:N_SIGMA]
        seed = act[N_SIGMA]
        seed_sc[...] = seed
        tr_sc[...] = yxm_ref[...] - jnp.tanh(off_ref[...])         # tracking_emb
        bg = (lab_ref[...] == 0).astype(jnp.float32)               # background mask (R,128)
        bg_ref[...] = _lane_row([jnp.sum(seed * seed * bg), jnp.sum(bg)])

    # ---- per (batch, instance) entry ----
    e = b * pl.num_programs(1) + j
    inst_id = ids_ref[e]                                           # -1 padding -> empty mask
    mask = (inst_ref[...] == inst_id).astype(jnp.float32)          # (R,128) in_mask
    cmask = mask * (cimg_ref[...] != 0).astype(jnp.float32)        # in_mask & center

    cnt = jnp.sum(mask)
    cnt_c = jnp.sum(cmask)
    safe = jnp.maximum(cnt, 1.0)
    safe_c = jnp.maximum(cnt_c, 1.0)
    one_center = jnp.logical_and(cnt_c > 0.5, cnt_c < 1.5)         # robust "== 1" test

    y0 = yxm_ref[0]
    y1 = yxm_ref[1]

    # center: yxm at the (single) center pixel, else mean of yxm over the instance
    cy = jnp.where(one_center, jnp.sum(y0 * cmask) / safe_c, jnp.sum(y0 * mask) / safe)
    cx = jnp.where(one_center, jnp.sum(y1 * cmask) / safe_c, jnp.sum(y1 * mask) / safe)

    # per-instance sigma mean and variance-loss sum (channels unrolled, N_SIGMA == 2)
    sig0 = sig_sc[0]
    sig1 = sig_sc[1]
    sm0 = jnp.sum(sig0 * mask) / safe
    sm1 = jnp.sum(sig1 * mask) / safe
    var_sum = (jnp.sum(((sig0 - sm0) ** 2) * mask) +
               jnp.sum(((sig1 - sm1) ** 2) * mask))

    s0 = jnp.exp(sm0 * 10.0)
    s1 = jnp.exp(sm1 * 10.0)
    dist = jnp.exp(-(((sp_sc[0] - cy) ** 2) * s0 + ((sp_sc[1] - cx) ** 2) * s1))
    seed_sum = jnp.sum(((seed_sc[...] - dist) ** 2) * mask)

    dist_ref[...] = dist.astype(dist_ref.dtype)                    # bf16 at the store only
    mask_ref[...] = mask.astype(mask_ref.dtype)
    stats_ref[...] = _lane_row([var_sum, seed_sum, cnt, cnt_c])

    # tracking term only for the first half of the batch
    tracked = b < half_b

    @pl.when(tracked)
    def _():
        gy = jnp.sum((y0 - offs_ref[0]) * cmask) / safe_c          # gt previous-frame center
        gx = jnp.sum((y1 - offs_ref[1]) * cmask) / safe_c
        dist_tr = jnp.exp(-(((tr_sc[0] - gy) ** 2) * s0 + ((tr_sc[1] - gx) ** 2) * s1))
        dist_tr_ref[...] = dist_tr.astype(dist_tr_ref.dtype)

    @pl.when(jnp.logical_not(tracked))
    def _():
        dist_tr_ref[...] = jnp.zeros_like(dist_tr_ref)             # keep output defined


# ----------------------------------------------------------------------------
# pallas_call wrapper
# ----------------------------------------------------------------------------
def embed_track_fused(ids, yxm, seg, off, lab, inst, cimg, offs, *, half_b, max_inst):
    n_b, c_seg, R, L = seg.shape
    n_entries = n_b * max_inst

    per_b3 = lambda b, j, ids_ref: (b, 0, 0)
    per_b4 = lambda b, j, ids_ref: (b, 0, 0, 0)
    per_e = lambda b, j, ids_ref: (b * max_inst + j, 0, 0)

    grid_spec = pltpu.PrefetchScalarGridSpec(
        num_scalar_prefetch=1,
        grid=(n_b, max_inst),
        in_specs=[
            pl.BlockSpec((2, R, L), lambda b, j, ids_ref: (0, 0, 0)),   # yxm (resident)
            pl.BlockSpec((None, c_seg, R, L), per_b4),                  # seg_pred  (per batch)
            pl.BlockSpec((None, 2, R, L), per_b4),                      # off_pred  (per batch)
            pl.BlockSpec((None, R, L), per_b3),                         # labels
            pl.BlockSpec((None, R, L), per_b3),                         # instances
            pl.BlockSpec((None, R, L), per_b3),                         # center images
            pl.BlockSpec((None, 2, R, L), per_b4),                      # gt offsets / yx_shape
        ],
        out_specs=(
            pl.BlockSpec((None, R, L), per_e),                          # dist           (bf16)
            pl.BlockSpec((None, R, L), per_e),                          # dist_tracking  (bf16)
            pl.BlockSpec((None, R, L), per_e),                          # in_mask        (bf16)
            pl.BlockSpec((None, 1, _LANE), per_e),                      # per-entry stats (f32)
            pl.BlockSpec((None, 1, _LANE), per_b3),                     # per-batch bg stats
        ),
        scratch_shapes=[
            pltpu.VMEM((2, R, L), jnp.float32),        # spatial_emb (cached per batch)
            pltpu.VMEM((N_SIGMA, R, L), jnp.float32),  # sigma
            pltpu.VMEM((R, L), jnp.float32),           # seed map
            pltpu.VMEM((2, R, L), jnp.float32),        # tracking_emb
        ],
    )
    kernel = functools.partial(_embed_track_kernel, half_b=half_b)
    return pl.pallas_call(
        kernel,
        grid_spec=grid_spec,
        out_shape=(
            jax.ShapeDtypeStruct((n_entries, R, L), jnp.bfloat16),
            jax.ShapeDtypeStruct((n_entries, R, L), jnp.bfloat16),
            jax.ShapeDtypeStruct((n_entries, R, L), jnp.bfloat16),
            jax.ShapeDtypeStruct((n_entries, 1, _LANE), jnp.float32),
            jax.ShapeDtypeStruct((n_b, 1, _LANE), jnp.float32),
        ),
        compiler_params=pltpu.CompilerParams(
            dimension_semantics=("parallel", "arbitrary"),
            vmem_limit_bytes=_vmem_limit_bytes()),
    )(ids, yxm, seg, off, lab, inst, cimg, offs)


# ----------------------------------------------------------------------------
# Lovasz hinge (plain JAX glue: needs a full sort) — payload sort, single cumsum
# ----------------------------------------------------------------------------
def lovasz_hinge_batch(logits, labels):
    # logits, labels: (N, P) f32
    signs = 2.0 * labels - 1.0
    errors = 1.0 - logits * signs
    neg_sorted, gt_sorted = jax.lax.sort((-errors, labels), num_keys=1)  # desc. errors
    errors_sorted = -neg_sorted
    P = labels.shape[1]
    gts = jnp.sum(gt_sorted, axis=1, keepdims=True)
    cum = jnp.cumsum(gt_sorted, axis=1)
    intersection = gts - cum
    union = gts + (jnp.arange(1, P + 1, dtype=jnp.float32)[None, :] - cum)
    jaccard = 1.0 - intersection / union
    grad = jnp.concatenate([jaccard[:, :1], jaccard[:, 1:] - jaccard[:, :-1]], axis=1)
    return jnp.sum(jax.nn.relu(errors_sorted) * grad, axis=1)            # (N,)


# ----------------------------------------------------------------------------
# EmbedTrackLoss.forward
# ----------------------------------------------------------------------------
def make_yxm(grid_y, grid_x, pixel_y, pixel_x):
    xm = jnp.broadcast_to(jnp.linspace(0.0, pixel_x, grid_x)[None, None, :],
                          (1, grid_y, grid_x))
    ym = jnp.broadcast_to(jnp.linspace(0.0, pixel_y, grid_y)[None, :, None],
                          (1, grid_y, grid_x))
    return jnp.concatenate([ym, xm], axis=0).astype(jnp.float32)


def embed_track_loss_forward(predictions, instances, labels, center_images,
                             offsets, instance_id_lists,
                             grid_y, grid_x, pixel_y=1.0, pixel_x=1.0,
                             foreground_weight=1.0,
                             w_inst=1.0, w_var=10.0, w_seed=1.0):
    seg_pred, off_pred = predictions
    B = seg_pred.shape[0]
    H, W = seg_pred.shape[2], seg_pred.shape[3]
    n_b = min(B, off_pred.shape[0])
    half_b = B // 2

    zero = jnp.float32(0.0)
    loss_values = {k: zero for k in ("instance", "variance", "seed", "track")}
    if n_b == 0:
        return zero, loss_values

    HW = H * W
    HWp = ((HW + _TILE - 1) // _TILE) * _TILE       # pad pixels to full (8,128) tiles
    R = HWp // _LANE                                # sublane rows (multiple of 8)
    pad = HWp - HW

    def flat(x, fill=0):
        # (..., H, W) -> (..., R, 128): pixel axis spans full dense vreg tiles
        x = x.reshape(x.shape[:-2] + (HW,))
        if pad:
            widths = [(0, 0)] * (x.ndim - 1) + [(0, pad)]
            x = jnp.pad(x, widths, constant_values=fill)
        return x.reshape(x.shape[:-1] + (R, _LANE))

    # flat per-batch instance-id table (stands in for torch.unique), -1 padded
    id_lists = [list(instance_id_lists[b]) if b < len(instance_id_lists) else []
                for b in range(n_b)]
    max_inst = max((len(l) for l in id_lists), default=0)
    if max_inst == 0:
        return zero, loss_values
    ids = jnp.array(
        [int(i) for l in id_lists for i in (l + [-1] * (max_inst - len(l)))],
        jnp.int32)                                                     # (n_b * max_inst,)

    yxm_flat = flat(make_yxm(grid_y, grid_x, pixel_y, pixel_x)[:, :H, :W])   # (2, R, 128)
    yx_shape = jnp.array([grid_y, grid_x], jnp.float32).reshape(1, 2, 1, 1)

    seg_flat = flat(seg_pred[:n_b]).astype(jnp.float32)                      # (n_b, 5, R, 128)
    off_flat = flat(off_pred[:n_b]).astype(jnp.float32)                      # (n_b, 2, R, 128)
    lab_flat = flat(labels[:n_b], fill=1).astype(jnp.int32)                  # pad != background
    inst_flat = flat(instances[:n_b]).astype(jnp.int32)
    cimg_flat = flat(center_images[:n_b]).astype(jnp.int32)
    offs_scaled = flat(offsets[:n_b]).astype(jnp.float32) / yx_shape

    dist, dist_tr, mask_f, stats, bg_stats = embed_track_fused(
        ids, yxm_flat, seg_flat, off_flat, lab_flat, inst_flat, cimg_flat,
        offs_scaled, half_b=half_b, max_inst=max_inst)

    n_entries = n_b * max_inst
    var_sum = stats[:, 0, 0]
    seed_sum = stats[:, 0, 1]
    cnt = stats[:, 0, 2]
    cnt_c = stats[:, 0, 3]
    valid = cnt_c > 0.5
    safe_cnt = jnp.maximum(cnt, 1.0)

    # drop lane padding before the (JAX) Lovasz sort stage
    dist2 = dist.astype(jnp.float32).reshape(n_entries, HWp)[:, :HW]
    mask2 = mask_f.astype(jnp.float32).reshape(n_entries, HWp)[:, :HW]
    lov = lovasz_hinge_batch(dist2 * 2.0 - 1.0, mask2)

    inst_b = jnp.sum(jnp.where(valid, lov, 0.0).reshape(n_b, max_inst), axis=1)
    var_b = jnp.sum(jnp.where(valid, var_sum / (N_SIGMA * safe_cnt), 0.0)
                    .reshape(n_b, max_inst), axis=1)
    seed_fg_b = jnp.sum(jnp.where(valid, foreground_weight * seed_sum / safe_cnt, 0.0)
                        .reshape(n_b, max_inst), axis=1)

    bg_sq = bg_stats[:, 0, 0]
    bg_cnt = bg_stats[:, 0, 1]
    bg_term = jnp.where(bg_cnt > 0, bg_sq / jnp.maximum(bg_cnt, 1.0), 0.0)
    has_inst = jnp.array([1.0 if len(l) > 0 else 0.0 for l in id_lists], jnp.float32)
    seed_b = (bg_term + seed_fg_b) * has_inst        # batches with no instances skipped

    instance_loss = w_inst * jnp.sum(inst_b)
    variance_loss = w_var * jnp.sum(var_b)
    seed_loss = w_seed * jnp.sum(seed_b)

    # tracking: only the first half of the batch (static slice halves the sort work)
    n_track_b = min(n_b, half_b)
    if n_track_b > 0:
        nt = n_track_b * max_inst
        dist_tr2 = dist_tr.astype(jnp.float32).reshape(n_entries, HWp)[:nt, :HW]
        lov_tr = lovasz_hinge_batch(dist_tr2 * 2.0 - 1.0, mask2[:nt])
        valid_tr = valid[:nt]
        track_sum = jnp.sum(jnp.where(valid_tr, lov_tr, 0.0))
        track_count = jnp.sum(valid_tr.astype(jnp.float32))
        track_loss = jnp.where(track_count > 0,
                               track_sum / jnp.maximum(track_count, 1.0), 0.0)
    else:
        track_loss = zero

    loss = (instance_loss + variance_loss + seed_loss + track_loss) / float(n_b)
    loss_values["instance"] = instance_loss
    loss_values["variance"] = variance_loss
    loss_values["seed"] = seed_loss
    loss_values["track"] = track_loss
    return loss, loss_values


# ----------------------------------------------------------------------------
# synthetic harness
# ----------------------------------------------------------------------------
if __name__ == "__main__":
    B, H, W = 2, 16, 16
    key = jax.random.PRNGKey(0)
    k1, k2, k3 = jax.random.split(key, 3)

    seg_pred = jax.random.normal(k1, (B, 2 + N_SIGMA + 1, H, W), jnp.float32)
    off_pred = jax.random.normal(k2, (B, 2, H, W), jnp.float32)
    offsets = jax.random.normal(k3, (B, 2, H, W), jnp.float32)

    # instance maps built from a known static id list (stands in for torch.unique)
    instances = jnp.zeros((B, H, W), jnp.int32)
    instances = instances.at[:, 0:5, 0:8].set(1)
    instances = instances.at[:, 5:10, 4:12].set(2)
    instances = instances.at[:, 10:14, 8:16].set(3)
    labels = (instances > 0).astype(jnp.int32)
    center_images = jnp.zeros((B, H, W), jnp.int32)
    center_images = center_images.at[:, 2, 4].set(1)
    center_images = center_images.at[:, 7, 8].set(1)
    center_images = center_images.at[:, 12, 12].set(1)
    instance_id_lists = [[1, 2, 3], [1, 2, 3]]

    loss, loss_vals = embed_track_loss_forward(
        (seg_pred, off_pred), instances, labels, center_images, offsets,
        instance_id_lists, grid_y=H, grid_x=W, pixel_y=1.0, pixel_x=1.0)

    loss = jax.block_until_ready(loss)
    for v in loss_vals.values():
        jax.block_until_ready(v)
    assert bool(jnp.isfinite(loss)), "loss is not finite"
    print("KERNEL_OK")
</pallas_src>

<mosaic_0001>
module attributes {stable_mosaic.version = 11 : i64} {
  func.func @_embed_track_kernel(%arg0: i32, %arg1: i32, %arg2: memref<6xi32, #tpu.memory_space<smem>>, %arg3: memref<2x8x128xf32, #tpu.memory_space<vmem>>, %arg4: memref<1x5x8x128xf32, #tpu.memory_space<vmem>>, %arg5: memref<1x2x8x128xf32, #tpu.memory_space<vmem>>, %arg6: memref<1x8x128xi32, #tpu.memory_space<vmem>>, %arg7: memref<1x8x128xi32, #tpu.memory_space<vmem>>, %arg8: memref<1x8x128xi32, #tpu.memory_space<vmem>>, %arg9: memref<1x2x8x128xf32, #tpu.memory_space<vmem>>, %arg10: memref<1x8x128xbf16, #tpu.memory_space<vmem>>, %arg11: memref<1x8x128xbf16, #tpu.memory_space<vmem>>, %arg12: memref<1x8x128xbf16, #tpu.memory_space<vmem>>, %arg13: memref<1x1x128xf32, #tpu.memory_space<vmem>>, %arg14: memref<1x1x128xf32, #tpu.memory_space<vmem>>, %arg15: memref<2x8x128xf32, #tpu.memory_space<vmem>>, %arg16: memref<2x8x128xf32, #tpu.memory_space<vmem>>, %arg17: memref<8x128xf32, #tpu.memory_space<vmem>>, %arg18: memref<2x8x128xf32, #tpu.memory_space<vmem>>) attributes {dimension_semantics = [#tpu.dimension_semantics<parallel>, #tpu.dimension_semantics<arbitrary>], iteration_bounds = array<i64: 2, 3>, scalar_prefetch = 1 : i64, scratch_operands = 4 : i64, tpu.core_type = #tpu.core_type<tc>, window_params = [{pipeline_mode = #tpu.pipeline_mode<synchronous>, transform_indices = @transform_0, window_bounds = array<i64: 2, 8, 128>}, {transform_indices = @transform_1, window_bounds = array<i64: 1, 5, 8, 128>}, {transform_indices = @transform_2, window_bounds = array<i64: 1, 2, 8, 128>}, {transform_indices = @transform_3, window_bounds = array<i64: 1, 8, 128>}, {transform_indices = @transform_4, window_bounds = array<i64: 1, 8, 128>}, {transform_indices = @transform_5, window_bounds = array<i64: 1, 8, 128>}, {transform_indices = @transform_6, window_bounds = array<i64: 1, 2, 8, 128>}, {transform_indices = @transform_7, window_bounds = array<i64: 1, 8, 128>}, {transform_indices = @transform_8, window_bounds = array<i64: 1, 8, 128>}, {transform_indices = @transform_9, window_bounds = array<i64: 1, 8, 128>}, {transform_indices = @transform_10, window_bounds = array<i64: 1, 1, 128>}, {transform_indices = @transform_11, window_bounds = array<i64: 1, 1, 128>}]} {
    %c0_i32 = arith.constant 0 : i32
    %0 = arith.cmpi eq, %arg1, %c0_i32 : i32
    %1 = arith.extui %0 : i1 to i32
    %c0_i32_0 = arith.constant 0 : i32
    %2 = arith.cmpi ne, %1, %c0_i32_0 : i32
    scf.if %2 {
      %c0_58 = arith.constant 0 : index
      %c0_59 = arith.constant 0 : index
      %c0_60 = arith.constant 0 : index
      %c0_61 = arith.constant 0 : index
      %161 = vector.load %arg4[%c0_58, %c0_59, %c0_60, %c0_61] : memref<1x5x8x128xf32, #tpu.memory_space<vmem>>, vector<1x5x8x128xf32>
      %162 = vector.shape_cast %161 : vector<1x5x8x128xf32> to vector<5x8x128xf32>
      %163 = vector.extract_strided_slice %162 {offsets = [0, 0, 0], sizes = [2, 8, 128], strides = [1, 1, 1]} : vector<5x8x128xf32> to vector<2x8x128xf32>
      %164 = math.tanh %163 : vector<2x8x128xf32>
      %c0_62 = arith.constant 0 : index
      %c0_63 = arith.constant 0 : index
      %c0_64 = arith.constant 0 : index
      %165 = vector.load %arg3[%c0_62, %c0_63, %c0_64] : memref<2x8x128xf32, #tpu.memory_space<vmem>>, vector<2x8x128xf32>
      %166 = arith.addf %164, %165 : vector<2x8x128xf32>
      %c0_65 = arith.constant 0 : index
      %c0_66 = arith.constant 0 : index
      %c0_67 = arith.constant 0 : index
      %167 = vector.load %arg15[%c0_65, %c0_66, %c0_67] : memref<2x8x128xf32, #tpu.memory_space<vmem>>, vector<2x8x128xf32>
      tpu.vector_store %arg15[%c0_65, %c0_66, %c0_67], %166 {strides = array<i32>} : memref<2x8x128xf32, #tpu.memory_space<vmem>>, vector<2x8x128xf32>,
      %168 = vector.extract_strided_slice %162 {offsets = [2, 0, 0], sizes = [3, 8, 128], strides = [1, 1, 1]} : vector<5x8x128xf32> to vector<3x8x128xf32>
      %169 = arith.negf %168 : vector<3x8x128xf32>
      %170 = math.exp %169 : vector<3x8x128xf32>
      %cst_68 = arith.constant 1.000000e+00 : f32
      %171 = vector.broadcast %cst_68 : f32 to vector<3x8x128xf32>
      %172 = arith.addf %171, %170 : vector<3x8x128xf32>
      %173 = arith.divf %171, %172 : vector<3x8x128xf32>
      %174 = vector.extract_strided_slice %173 {offsets = [0, 0, 0], sizes = [2, 8, 128], strides = [1, 1, 1]} : vector<3x8x128xf32> to vector<2x8x128xf32>
      %c0_69 = arith.constant 0 : index
      %c0_70 = arith.constant 0 : index
      %c0_71 = arith.constant 0 : index
      %175 = vector.load %arg16[%c0_69, %c0_70, %c0_71] : memref<2x8x128xf32, #tpu.memory_space<vmem>>, vector<2x8x128xf32>
      tpu.vector_store %arg16[%c0_69, %c0_70, %c0_71], %174 {strides = array<i32>} : memref<2x8x128xf32, #tpu.memory_space<vmem>>, vector<2x8x128xf32>,
      %176 = vector.extract_strided_slice %173 {offsets = [2, 0, 0], sizes = [1, 8, 128], strides = [1, 1, 1]} : vector<3x8x128xf32> to vector<1x8x128xf32>
      %177 = vector.shape_cast %176 : vector<1x8x128xf32> to vector<8x128xf32>
      %c0_72 = arith.constant 0 : index
      %c0_73 = arith.constant 0 : index
      %178 = vector.load %arg17[%c0_72, %c0_73] : memref<8x128xf32, #tpu.memory_space<vmem>>, vector<8x128xf32>
      tpu.vector_store %arg17[%c0_72, %c0_73], %177 {strides = array<i32>} : memref<8x128xf32, #tpu.memory_space<vmem>>, vector<8x128xf32>,
      %c0_74 = arith.constant 0 : index
      %c0_75 = arith.constant 0 : index
      %c0_76 = arith.constant 0 : index
      %179 = vector.load %arg3[%c0_74, %c0_75, %c0_76] : memref<2x8x128xf32, #tpu.memory_space<vmem>>, vector<2x8x128xf32>
      %c0_77 = arith.constant 0 : index
      %c0_78 = arith.constant 0 : index
      %c0_79 = arith.constant 0 : index
      %c0_80 = arith.constant 0 : index
      %180 = vector.load %arg5[%c0_77, %c0_78, %c0_79, %c0_80] : memref<1x2x8x128xf32, #tpu.memory_space<vmem>>, vector<1x2x8x128xf32>
      %181 = vector.shape_cast %180 : vector<1x2x8x128xf32> to vector<2x8x128xf32>
      %182 = math.tanh %181 : vector<2x8x128xf32>
      %183 = arith.subf %179, %182 : vector<2x8x128xf32>
      %c0_81 = arith.constant 0 : index
      %c0_82 = arith.constant 0 : index
      %c0_83 = arith.constant 0 : index
      %184 = vector.load %arg18[%c0_81, %c0_82, %c0_83] : memref<2x8x128xf32, #tpu.memory_space<vmem>>, vector<2x8x128xf32>
      tpu.vector_store %arg18[%c0_81, %c0_82, %c0_83], %183 {strides = array<i32>} : memref<2x8x128xf32, #tpu.memory_space<vmem>>, vector<2x8x128xf32>,
      %c0_84 = arith.constant 0 : index
      %c0_85 = arith.constant 0 : index
      %c0_86 = arith.constant 0 : index
      %185 = vector.load %arg6[%c0_84, %c0_85, %c0_86] : memref<1x8x128xi32, #tpu.memory_space<vmem>>, vector<1x8x128xi32>
      %186 = vector.shape_cast %185 : vector<1x8x128xi32> to vector<8x128xi32>
      %c0_i32_87 = arith.constant 0 : i32
      %187 = vector.broadcast %c0_i32_87 : i32 to vector<8x128xi32>
      %188 = arith.cmpi eq, %186, %187 : vector<8x128xi32>
      %189 = arith.extui %188 : vector<8x128xi1> to vector<8x128xi32>
      %190 = arith.sitofp %189 : vector<8x128xi32> to vector<8x128xf32>
      %191 = arith.mulf %177, %177 : vector<8x128xf32>
      %192 = arith.mulf %191, %190 : vector<8x128xf32>
      %193 = vector.shape_cast %192 : vector<8x128xf32> to vector<1x8x128xf32>
      %cst_88 = arith.constant dense<0.000000e+00> : vector<1xf32>
      %194 = vector.multi_reduction <add>, %193, %cst_88 [1, 2] : vector<1x8x128xf32> to vector<1xf32>
      %195 = vector.shape_cast %194 : vector<1xf32> to vector<1x1x1xf32>
      %196 = vector.extract %195[0, 0, 0] : f32 from vector<1x1x1xf32>
      %197 = vector.shape_cast %190 : vector<8x128xf32> to vector<1x8x128xf32>
      %cst_89 = arith.constant dense<0.000000e+00> : vector<1xf32>
      %198 = vector.multi_reduction <add>, %197, %cst_89 [1, 2] : vector<1x8x128xf32> to vector<1xf32>
      %199 = vector.shape_cast %198 : vector<1xf32> to vector<1x1x1xf32>
      %200 = vector.extract %199[0, 0, 0] : f32 from vector<1x1x1xf32>
      %201 = tpu.iota {dimensions = array<i32: 1>} : vector<1x128xi32>
      %cst_90 = arith.constant 0.000000e+00 : f32
      %202 = vector.broadcast %cst_90 : f32 to vector<1x128xf32>
      %c0_i32_91 = arith.constant 0 : i32
      %203 = vector.broadcast %c0_i32_91 : i32 to vector<1x128xi32>
      %204 = arith.cmpi eq, %201, %203 : vector<1x128xi32>
      %205 = vector.broadcast %196 : f32 to vector<1x128xf32>
      %206 = arith.select %204, %205, %202 : vector<1x128xi1>, vector<1x128xf32>
      %c1_i32_92 = arith.constant 1 : i32
      %207 = vector.broadcast %c1_i32_92 : i32 to vector<1x128xi32>
      %208 = arith.cmpi eq, %201, %207 : vector<1x128xi32>
      %209 = vector.broadcast %200 : f32 to vector<1x128xf32>
      %210 = arith.select %208, %209, %206 : vector<1x128xi1>, vector<1x128xf32>
      %c0_93 = arith.constant 0 : index
      %c0_94 = arith.constant 0 : index
      %c0_95 = arith.constant 0 : index
      %211 = vector.load %arg14[%c0_93, %c0_94, %c0_95] : memref<1x1x128xf32, #tpu.memory_space<vmem>>, vector<1x1x128xf32>
      %212 = vector.shape_cast %211 : vector<1x1x128xf32> to vector<1x128xf32>
      %213 = vector.shape_cast %210 : vector<1x128xf32> to vector<1x1x128xf32>
      tpu.vector_store %arg14[%c0_93, %c0_94, %c0_95], %213 {strides = array<i32>} : memref<1x1x128xf32, #tpu.memory_space<vmem>>, vector<1x1x128xf32>,
    } else {
    }
    %c3_i32 = arith.constant 3 : i32
    %3 = arith.muli %arg0, %c3_i32 : i32
    %4 = arith.addi %3, %arg1 : i32
    %5 = arith.index_cast %4 : i32 to index
    %6 = memref.load %arg2[%5] : memref<6xi32, #tpu.memory_space<smem>>
    %c0 = arith.constant 0 : index
    %c0_1 = arith.constant 0 : index
    %c0_2 = arith.constant 0 : index
    %7 = vector.load %arg7[%c0, %c0_1, %c0_2] : memref<1x8x128xi32, #tpu.memory_space<vmem>>, vector<1x8x128xi32>
    %8 = vector.shape_cast %7 : vector<1x8x128xi32> to vector<8x128xi32>
    %9 = vector.broadcast %6 : i32 to vector<8x128xi32>
    %10 = arith.cmpi eq, %8, %9 : vector<8x128xi32>
    %11 = arith.extui %10 : vector<8x128xi1> to vector<8x128xi32>
    %12 = arith.sitofp %11 : vector<8x128xi32> to vector<8x128xf32>
    %c0_3 = arith.constant 0 : index
    %c0_4 = arith.constant 0 : index
    %c0_5 = arith.constant 0 : index
    %13 = vector.load %arg8[%c0_3, %c0_4, %c0_5] : memref<1x8x128xi32, #tpu.memory_space<vmem>>, vector<1x8x128xi32>
    %14 = vector.shape_cast %13 : vector<1x8x128xi32> to vector<8x128xi32>
    %c0_i32_6 = arith.constant 0 : i32
    %15 = vector.broadcast %c0_i32_6 : i32 to vector<8x128xi32>
    %16 = arith.cmpi ne, %14, %15 : vector<8x128xi32>
    %17 = arith.extui %16 : vector<8x128xi1> to vector<8x128xi32>
    %18 = arith.sitofp %17 : vector<8x128xi32> to vector<8x128xf32>
    %19 = arith.mulf %12, %18 : vector<8x128xf32>
    %20 = vector.shape_cast %12 : vector<8x128xf32> to vector<1x8x128xf32>
    %cst = arith.constant dense<0.000000e+00> : vector<1xf32>
    %21 = vector.multi_reduction <add>, %20, %cst [1, 2] : vector<1x8x128xf32> to vector<1xf32>
    %22 = vector.shape_cast %21 : vector<1xf32> to vector<1x1x1xf32>
    %23 = vector.extract %22[0, 0, 0] : f32 from vector<1x1x1xf32>
    %24 = vector.shape_cast %19 : vector<8x128xf32> to vector<1x8x128xf32>
    %cst_7 = arith.constant dense<0.000000e+00> : vector<1xf32>
    %25 = vector.multi_reduction <add>, %24, %cst_7 [1, 2] : vector<1x8x128xf32> to vector<1xf32>
    %26 = vector.shape_cast %25 : vector<1xf32> to vector<1x1x1xf32>
    %27 = vector.extract %26[0, 0, 0] : f32 from vector<1x1x1xf32>
    %cst_8 = arith.constant 1.000000e+00 : f32
    %28 = arith.maximumf %23, %cst_8 : f32
    %cst_9 = arith.constant 1.000000e+00 : f32
    %29 = arith.maximumf %27, %cst_9 : f32
    %cst_10 = arith.constant 5.000000e-01 : f32
    %30 = arith.cmpf ogt, %27, %cst_10 : f32
    %cst_11 = arith.constant 1.500000e+00 : f32
    %31 = arith.cmpf olt, %27, %cst_11 : f32
    %32 = arith.andi %30, %31 : i1
    %c0_12 = arith.constant 0 : index
    %c0_13 = arith.constant 0 : index
    %c0_14 = arith.constant 0 : index
    %33 = vector.load %arg3[%c0_12, %c0_13, %c0_14] : memref<2x8x128xf32, #tpu.memory_space<vmem>>, vector<1x8x128xf32>
    %34 = vector.shape_cast %33 : vector<1x8x128xf32> to vector<8x128xf32>
    %c1 = arith.constant 1 : index
    %c0_15 = arith.constant 0 : index
    %c0_16 = arith.constant 0 : index
    %35 = vector.load %arg3[%c1, %c0_15, %c0_16] : memref<2x8x128xf32, #tpu.memory_space<vmem>>, vector<1x8x128xf32>
    %36 = vector.shape_cast %35 : vector<1x8x128xf32> to vector<8x128xf32>
    %37 = arith.mulf %34, %19 : vector<8x128xf32>
    %38 = vector.shape_cast %37 : vector<8x128xf32> to vector<1x8x128xf32>
    %cst_17 = arith.constant dense<0.000000e+00> : vector<1xf32>
    %39 = vector.multi_reduction <add>, %38, %cst_17 [1, 2] : vector<1x8x128xf32> to vector<1xf32>
    %40 = vector.shape_cast %39 : vector<1xf32> to vector<1x1x1xf32>
    %41 = vector.extract %40[0, 0, 0] : f32 from vector<1x1x1xf32>
    %42 = arith.divf %41, %29 : f32
    %43 = arith.mulf %34, %12 : vector<8x128xf32>
    %44 = vector.shape_cast %43 : vector<8x128xf32> to vector<1x8x128xf32>
    %cst_18 = arith.constant dense<0.000000e+00> : vector<1xf32>
    %45 = vector.multi_reduction <add>, %44, %cst_18 [1, 2] : vector<1x8x128xf32> to vector<1xf32>
    %46 = vector.shape_cast %45 : vector<1xf32> to vector<1x1x1xf32>
    %47 = vector.extract %46[0, 0, 0] : f32 from vector<1x1x1xf32>
    %48 = arith.divf %47, %28 : f32
    %49 = arith.select %32, %42, %48 : f32
    %50 = arith.mulf %36, %19 : vector<8x128xf32>
    %51 = vector.shape_cast %50 : vector<8x128xf32> to vector<1x8x128xf32>
    %cst_19 = arith.constant dense<0.000000e+00> : vector<1xf32>
    %52 = vector.multi_reduction <add>, %51, %cst_19 [1, 2] : vector<1x8x128xf32> to vector<1xf32>
    %53 = vector.shape_cast %52 : vector<1xf32> to vector<1x1x1xf32>
    %54 = vector.extract %53[0, 0, 0] : f32 from vector<1x1x1xf32>
    %55 = arith.divf %54, %29 : f32
    %56 = arith.mulf %36, %12 : vector<8x128xf32>
    %57 = vector.shape_cast %56 : vector<8x128xf32> to vector<1x8x128xf32>
    %cst_20 = arith.constant dense<0.000000e+00> : vector<1xf32>
    %58 = vector.multi_reduction <add>, %57, %cst_20 [1, 2] : vector<1x8x128xf32> to vector<1xf32>
    %59 = vector.shape_cast %58 : vector<1xf32> to vector<1x1x1xf32>
    %60 = vector.extract %59[0, 0, 0] : f32 from vector<1x1x1xf32>
    %61 = arith.divf %60, %28 : f32
    %62 = arith.select %32, %55, %61 : f32
    %c0_21 = arith.constant 0 : index
    %c0_22 = arith.constant 0 : index
    %c0_23 = arith.constant 0 : index
    %63 = vector.load %arg16[%c0_21, %c0_22, %c0_23] : memref<2x8x128xf32, #tpu.memory_space<vmem>>, vector<1x8x128xf32>
    %64 = vector.shape_cast %63 : vector<1x8x128xf32> to vector<8x128xf32>
    %c1_24 = arith.constant 1 : index
    %c0_25 = arith.constant 0 : index
    %c0_26 = arith.constant 0 : index
    %65 = vector.load %arg16[%c1_24, %c0_25, %c0_26] : memref<2x8x128xf32, #tpu.memory_space<vmem>>, vector<1x8x128xf32>
    %66 = vector.shape_cast %65 : vector<1x8x128xf32> to vector<8x128xf32>
    %67 = arith.mulf %64, %12 : vector<8x128xf32>
    %68 = vector.shape_cast %67 : vector<8x128xf32> to vector<1x8x128xf32>
    %cst_27 = arith.constant dense<0.000000e+00> : vector<1xf32>
    %69 = vector.multi_reduction <add>, %68, %cst_27 [1, 2] : vector<1x8x128xf32> to vector<1xf32>
    %70 = vector.shape_cast %69 : vector<1xf32> to vector<1x1x1xf32>
    %71 = vector.extract %70[0, 0, 0] : f32 from vector<1x1x1xf32>
    %72 = arith.divf %71, %28 : f32
    %73 = arith.mulf %66, %12 : vector<8x128xf32>
    %74 = vector.shape_cast %73 : vector<8x128xf32> to vector<1x8x128xf32>
    %cst_28 = arith.constant dense<0.000000e+00> : vector<1xf32>
    %75 = vector.multi_reduction <add>, %74, %cst_28 [1, 2] : vector<1x8x128xf32> to vector<1xf32>
    %76 = vector.shape_cast %75 : vector<1xf32> to vector<1x1x1xf32>
    %77 = vector.extract %76[0, 0, 0] : f32 from vector<1x1x1xf32>
    %78 = arith.divf %77, %28 : f32
    %79 = vector.broadcast %72 : f32 to vector<8x128xf32>
    %80 = arith.subf %64, %79 : vector<8x128xf32>
    %81 = arith.mulf %80, %80 : vector<8x128xf32>
    %82 = arith.mulf %81, %12 : vector<8x128xf32>
    %83 = vector.shape_cast %82 : vector<8x128xf32> to vector<1x8x128xf32>
    %cst_29 = arith.constant dense<0.000000e+00> : vector<1xf32>
    %84 = vector.multi_reduction <add>, %83, %cst_29 [1, 2] : vector<1x8x128xf32> to vector<1xf32>
    %85 = vector.shape_cast %84 : vector<1xf32> to vector<1x1x1xf32>
    %86 = vector.extract %85[0, 0, 0] : f32 from vector<1x1x1xf32>
    %87 = vector.broadcast %78 : f32 to vector<8x128xf32>
    %88 = arith.subf %66, %87 : vector<8x128xf32>
    %89 = arith.mulf %88, %88 : vector<8x128xf32>
    %90 = arith.mulf %89, %12 : vector<8x128xf32>
    %91 = vector.shape_cast %90 : vector<8x128xf32> to vector<1x8x128xf32>
    %cst_30 = arith.constant dense<0.000000e+00> : vector<1xf32>
    %92 = vector.multi_reduction <add>, %91, %cst_30 [1, 2] : vector<1x8x128xf32> to vector<1xf32>
    %93 = vector.shape_cast %92 : vector<1xf32> to vector<1x1x1xf32>
    %94 = vector.extract %93[0, 0, 0] : f32 from vector<1x1x1xf32>
    %95 = arith.addf %86, %94 : f32
    %cst_31 = arith.constant 1.000000e+01 : f32
    %96 = arith.mulf %72, %cst_31 : f32
    %97 = math.exp %96 : f32
    %cst_32 = arith.constant 1.000000e+01 : f32
    %98 = arith.mulf %78, %cst_32 : f32
    %99 = math.exp %98 : f32
    %c0_33 = arith.constant 0 : index
    %c0_34 = arith.constant 0 : index
    %c0_35 = arith.constant 0 : index
    %100 = vector.load %arg15[%c0_33, %c0_34, %c0_35] : memref<2x8x128xf32, #tpu.memory_space<vmem>>, vector<1x8x128xf32>
    %101 = vector.shape_cast %100 : vector<1x8x128xf32> to vector<8x128xf32>
    %102 = vector.broadcast %49 : f32 to vector<8x128xf32>
    %103 = arith.subf %101, %102 : vector<8x128xf32>
    %104 = arith.mulf %103, %103 : vector<8x128xf32>
    %105 = vector.broadcast %97 : f32 to vector<8x128xf32>
    %106 = arith.mulf %104, %105 : vector<8x128xf32>
    %c1_36 = arith.constant 1 : index
    %c0_37 = arith.constant 0 : index
    %c0_38 = arith.constant 0 : index
    %107 = vector.load %arg15[%c1_36, %c0_37, %c0_38] : memref<2x8x128xf32, #tpu.memory_space<vmem>>, vector<1x8x128xf32>
    %108 = vector.shape_cast %107 : vector<1x8x128xf32> to vector<8x128xf32>
    %109 = vector.broadcast %62 : f32 to vector<8x128xf32>
    %110 = arith.subf %108, %109 : vector<8x128xf32>
    %111 = arith.mulf %110, %110 : vector<8x128xf32>
    %112 = vector.broadcast %99 : f32 to vector<8x128xf32>
    %113 = arith.mulf %111, %112 : vector<8x128xf32>
    %114 = arith.addf %106, %113 : vector<8x128xf32>
    %cst_39 = arith.constant 0.000000e+00 : f32
    %115 = vector.broadcast %cst_39 : f32 to vector<8x128xf32>
    %116 = arith.subf %115, %114 : vector<8x128xf32>
    %117 = math.exp %116 : vector<8x128xf32>
    %c0_40 = arith.constant 0 : index
    %c0_41 = arith.constant 0 : index
    %118 = vector.load %arg17[%c0_40, %c0_41] : memref<8x128xf32, #tpu.memory_space<vmem>>, vector<8x128xf32>
    %119 = arith.subf %118, %117 : vector<8x128xf32>
    %120 = arith.mulf %119, %119 : vector<8x128xf32>
    %121 = arith.mulf %120, %12 : vector<8x128xf32>
    %122 = vector.shape_cast %121 : vector<8x128xf32> to vector<1x8x128xf32>
    %cst_42 = arith.constant dense<0.000000e+00> : vector<1xf32>
    %123 = vector.multi_reduction <add>, %122, %cst_42 [1, 2] : vector<1x8x128xf32> to vector<1xf32>
    %124 = vector.shape_cast %123 : vector<1xf32> to vector<1x1x1xf32>
    %125 = vector.extract %124[0, 0, 0] : f32 from vector<1x1x1xf32>
    %126 = arith.truncf %117 : vector<8x128xf32> to vector<8x128xbf16>
    %c0_43 = arith.constant 0 : index
    %c0_44 = arith.constant 0 : index
    %c0_45 = arith.constant 0 : index
    %127 = vector.load %arg10[%c0_43, %c0_44, %c0_45] : memref<1x8x128xbf16, #tpu.memory_space<vmem>>, vector<1x8x128xbf16>
    %128 = vector.shape_cast %127 : vector<1x8x128xbf16> to vector<8x128xbf16>
    %129 = vector.shape_cast %126 : vector<8x128xbf16> to vector<1x8x128xbf16>
    tpu.vector_store %arg10[%c0_43, %c0_44, %c0_45], %129 {strides = array<i32>} : memref<1x8x128xbf16, #tpu.memory_space<vmem>>, vector<1x8x128xbf16>,
    %130 = arith.truncf %12 : vector<8x128xf32> to vector<8x128xbf16>
    %c0_46 = arith.constant 0 : index
    %c0_47 = arith.constant 0 : index
    %c0_48 = arith.constant 0 : index
    %131 = vector.load %arg12[%c0_46, %c0_47, %c0_48] : memref<1x8x128xbf16, #tpu.memory_space<vmem>>, vector<1x8x128xbf16>
    %132 = vector.shape_cast %131 : vector<1x8x128xbf16> to vector<8x128xbf16>
    %133 = vector.shape_cast %130 : vector<8x128xbf16> to vector<1x8x128xbf16>
    tpu.vector_store %arg12[%c0_46, %c0_47, %c0_48], %133 {strides = array<i32>} : memref<1x8x128xbf16, #tpu.memory_space<vmem>>, vector<1x8x128xbf16>,
    %134 = tpu.iota {dimensions = array<i32: 1>} : vector<1x128xi32>
    %cst_49 = arith.constant 0.000000e+00 : f32
    %135 = vector.broadcast %cst_49 : f32 to vector<1x128xf32>
    %c0_i32_50 = arith.constant 0 : i32
    %136 = vector.broadcast %c0_i32_50 : i32 to vector<1x128xi32>
    %137 = arith.cmpi eq, %134, %136 : vector<1x128xi32>
    %138 = vector.broadcast %95 : f32 to vector<1x128xf32>
    %139 = arith.select %137, %138, %135 : vector<1x128xi1>, vector<1x128xf32>
    %c1_i32 = arith.constant 1 : i32
    %140 = vector.broadcast %c1_i32 : i32 to vector<1x128xi32>
    %141 = arith.cmpi eq, %134, %140 : vector<1x128xi32>
    %142 = vector.broadcast %125 : f32 to vector<1x128xf32>
    %143 = arith.select %141, %142, %139 : vector<1x128xi1>, vector<1x128xf32>
    %c2_i32 = arith.constant 2 : i32
    %144 = vector.broadcast %c2_i32 : i32 to vector<1x128xi32>
    %145 = arith.cmpi eq, %134, %144 : vector<1x128xi32>
    %146 = vector.broadcast %23 : f32 to vector<1x128xf32>
    %147 = arith.select %145, %146, %143 : vector<1x128xi1>, vector<1x128xf32>
    %c3_i32_51 = arith.constant 3 : i32
    %148 = vector.broadcast %c3_i32_51 : i32 to vector<1x128xi32>
    %149 = arith.cmpi eq, %134, %148 : vector<1x128xi32>
    %150 = vector.broadcast %27 : f32 to vector<1x128xf32>
    %151 = arith.select %149, %150, %147 : vector<1x128xi1>, vector<1x128xf32>
    %c0_52 = arith.constant 0 : index
    %c0_53 = arith.constant 0 : index
    %c0_54 = arith.constant 0 : index
    %152 = vector.load %arg13[%c0_52, %c0_53, %c0_54] : memref<1x1x128xf32, #tpu.memory_space<vmem>>, vector<1x1x128xf32>
    %153 = vector.shape_cast %152 : vector<1x1x128xf32> to vector<1x128xf32>
    %154 = vector.shape_cast %151 : vector<1x128xf32> to vector<1x1x128xf32>
    tpu.vector_store %arg13[%c0_52, %c0_53, %c0_54], %154 {strides = array<i32>} : memref<1x1x128xf32, #tpu.memory_space<vmem>>, vector<1x1x128xf32>,
    %c1_i32_55 = arith.constant 1 : i32
    %155 = arith.cmpi slt, %arg0, %c1_i32_55 : i32
    %156 = arith.extui %155 : i1 to i32
    %c0_i32_56 = arith.constant 0 : i32
    %157 = arith.cmpi ne, %156, %c0_i32_56 : i32
    scf.if %157 {
      %c0_58 = arith.constant 0 : index
      %c0_59 = arith.constant 0 : index
      %c0_60 = arith.constant 0 : index
      %c0_61 = arith.constant 0 : index
      %161 = vector.load %arg9[%c0_58, %c0_59, %c0_60, %c0_61] : memref<1x2x8x128xf32, #tpu.memory_space<vmem>>, vector<1x1x8x128xf32>
      %162 = vector.shape_cast %161 : vector<1x1x8x128xf32> to vector<8x128xf32>
      %163 = arith.subf %34, %162 : vector<8x128xf32>
      %164 = arith.mulf %163, %19 : vector<8x128xf32>
      %165 = vector.shape_cast %164 : vector<8x128xf32> to vector<1x8x128xf32>
      %cst_62 = arith.constant dense<0.000000e+00> : vector<1xf32>
      %166 = vector.multi_reduction <add>, %165, %cst_62 [1, 2] : vector<1x8x128xf32> to vector<1xf32>
      %167 = vector.shape_cast %166 : vector<1xf32> to vector<1x1x1xf32>
      %168 = vector.extract %167[0, 0, 0] : f32 from vector<1x1x1xf32>
      %169 = arith.divf %168, %29 : f32
      %c0_63 = arith.constant 0 : index
      %c1_64 = arith.constant 1 : index
      %c0_65 = arith.constant 0 : index
      %c0_66 = arith.constant 0 : index
      %170 = vector.load %arg9[%c0_63, %c1_64, %c0_65, %c0_66] : memref<1x2x8x128xf32, #tpu.memory_space<vmem>>, vector<1x1x8x128xf32>
      %171 = vector.shape_cast %170 : vector<1x1x8x128xf32> to vector<8x128xf32>
      %172 = arith.subf %36, %171 : vector<8x128xf32>
      %173 = arith.mulf %172, %19 : vector<8x128xf32>
      %174 = vector.shape_cast %173 : vector<8x128xf32> to vector<1x8x128xf32>
      %cst_67 = arith.constant dense<0.000000e+00> : vector<1xf32>
      %175 = vector.multi_reduction <add>, %174, %cst_67 [1, 2] : vector<1x8x128xf32> to vector<1xf32>
      %176 = vector.shape_cast %175 : vector<1xf32> to vector<1x1x1xf32>
      %177 = vector.extract %176[0, 0, 0] : f32 from vector<1x1x1xf32>
      %178 = arith.divf %177, %29 : f32
      %c0_68 = arith.constant 0 : index
      %c0_69 = arith.constant 0 : index
      %c0_70 = arith.constant 0 : index
      %179 = vector.load %arg18[%c0_68, %c0_69, %c0_70] : memref<2x8x128xf32, #tpu.memory_space<vmem>>, vector<1x8x128xf32>
      %180 = vector.shape_cast %179 : vector<1x8x128xf32> to vector<8x128xf32>
      %181 = vector.broadcast %169 : f32 to vector<8x128xf32>
      %182 = arith.subf %180, %181 : vector<8x128xf32>
      %183 = arith.mulf %182, %182 : vector<8x128xf32>
      %184 = vector.broadcast %97 : f32 to vector<8x128xf32>
      %185 = arith.mulf %183, %184 : vector<8x128xf32>
      %c1_71 = arith.constant 1 : index
      %c0_72 = arith.constant 0 : index
      %c0_73 = arith.constant 0 : index
      %186 = vector.load %arg18[%c1_71, %c0_72, %c0_73] : memref<2x8x128xf32, #tpu.memory_space<vmem>>, vector<1x8x128xf32>
      %187 = vector.shape_cast %186 : vector<1x8x128xf32> to vector<8x128xf32>
      %188 = vector.broadcast %178 : f32 to vector<8x128xf32>
      %189 = arith.subf %187, %188 : vector<8x128xf32>
      %190 = arith.mulf %189, %189 : vector<8x128xf32>
      %191 = vector.broadcast %99 : f32 to vector<8x128xf32>
      %192 = arith.mulf %190, %191 : vector<8x128xf32>
      %193 = arith.addf %185, %192 : vector<8x128xf32>
      %cst_74 = arith.constant 0.000000e+00 : f32
      %194 = vector.broadcast %cst_74 : f32 to vector<8x128xf32>
      %195 = arith.subf %194, %193 : vector<8x128xf32>
      %196 = math.exp %195 : vector<8x128xf32>
      %197 = arith.truncf %196 : vector<8x128xf32> to vector<8x128xbf16>
      %c0_75 = arith.constant 0 : index
      %c0_76 = arith.constant 0 : index
      %c0_77 = arith.constant 0 : index
      %198 = vector.load %arg11[%c0_75, %c0_76, %c0_77] : memref<1x8x128xbf16, #tpu.memory_space<vmem>>, vector<1x8x128xbf16>
      %199 = vector.shape_cast %198 : vector<1x8x128xbf16> to vector<8x128xbf16>
      %200 = vector.shape_cast %197 : vector<8x128xbf16> to vector<1x8x128xbf16>
      tpu.vector_store %arg11[%c0_75, %c0_76, %c0_77], %200 {strides = array<i32>} : memref<1x8x128xbf16, #tpu.memory_space<vmem>>, vector<1x8x128xbf16>,
    } else {
    }
    %true = arith.constant true
    %158 = arith.xori %155, %true : i1
    %159 = arith.extui %158 : i1 to i32
    %c0_i32_57 = arith.constant 0 : i32
    %160 = arith.cmpi ne, %159, %c0_i32_57 : i32
    scf.if %160 {
      %cst_58 = arith.constant 0.000000e+00 : bf16
      %161 = vector.broadcast %cst_58 : bf16 to vector<8x128xbf16>
      %c0_59 = arith.constant 0 : index
      %c0_60 = arith.constant 0 : index
      %c0_61 = arith.constant 0 : index
      %162 = vector.load %arg11[%c0_59, %c0_60, %c0_61] : memref<1x8x128xbf16, #tpu.memory_space<vmem>>, vector<1x8x128xbf16>
      %163 = vector.shape_cast %162 : vector<1x8x128xbf16> to vector<8x128xbf16>
      %164 = vector.shape_cast %161 : vector<8x128xbf16> to vector<1x8x128xbf16>
      tpu.vector_store %arg11[%c0_59, %c0_60, %c0_61], %164 {strides = array<i32>} : memref<1x8x128xbf16, #tpu.memory_space<vmem>>, vector<1x8x128xbf16>,
    } else {
    }
    return
  }
  func.func @transform_0(%arg0: i32, %arg1: i32, %arg2: memref<6xi32, #tpu.memory_space<smem>>) -> (i32, i32, i32) {
    %c0_i32 = arith.constant 0 : i32
    %c0_i32_0 = arith.constant 0 : i32
    %c0_i32_1 = arith.constant 0 : i32
    %c0_i32_2 = arith.constant 0 : i32
    return %c0_i32, %c0_i32_0, %c0_i32_1 : i32, i32, i32
  }
  func.func @transform_1(%arg0: i32, %arg1: i32, %arg2: memref<6xi32, #tpu.memory_space<smem>>) -> (i32, i32, i32, i32) {
    %c0_i32 = arith.constant 0 : i32
    %c0_i32_0 = arith.constant 0 : i32
    %c0_i32_1 = arith.constant 0 : i32
    %c0_i32_2 = arith.constant 0 : i32
    return %arg0, %c0_i32, %c0_i32_0, %c0_i32_1 : i32, i32, i32, i32
  }
  func.func @transform_2(%arg0: i32, %arg1: i32, %arg2: memref<6xi32, #tpu.memory_space<smem>>) -> (i32, i32, i32, i32) {
    %c0_i32 = arith.constant 0 : i32
    %c0_i32_0 = arith.constant 0 : i32
    %c0_i32_1 = arith.constant 0 : i32
    %c0_i32_2 = arith.constant 0 : i32
    return %arg0, %c0_i32, %c0_i32_0, %c0_i32_1 : i32, i32, i32, i32
  }
  func.func @transform_3(%arg0: i32, %arg1: i32, %arg2: memref<6xi32, #tpu.memory_space<smem>>) -> (i32, i32, i32) {
    %c0_i32 = arith.constant 0 : i32
    %c0_i32_0 = arith.constant 0 : i32
    %c0_i32_1 = arith.constant 0 : i32
    return %arg0, %c0_i32, %c0_i32_0 : i32, i32, i32
  }
  func.func @transform_4(%arg0: i32, %arg1: i32, %arg2: memref<6xi32, #tpu.memory_space<smem>>) -> (i32, i32, i32) {
    %c0_i32 = arith.constant 0 : i32
    %c0_i32_0 = arith.constant 0 : i32
    %c0_i32_1 = arith.constant 0 : i32
    return %arg0, %c0_i32, %c0_i32_0 : i32, i32, i32
  }
  func.func @transform_5(%arg0: i32, %arg1: i32, %arg2: memref<6xi32, #tpu.memory_space<smem>>) -> (i32, i32, i32) {
    %c0_i32 = arith.constant 0 : i32
    %c0_i32_0 = arith.constant 0 : i32
    %c0_i32_1 = arith.constant 0 : i32
    return %arg0, %c0_i32, %c0_i32_0 : i32, i32, i32
  }
  func.func @transform_6(%arg0: i32, %arg1: i32, %arg2: memref<6xi32, #tpu.memory_space<smem>>) -> (i32, i32, i32, i32) {
    %c0_i32 = arith.constant 0 : i32
    %c0_i32_0 = arith.constant 0 : i32
    %c0_i32_1 = arith.constant 0 : i32
    %c0_i32_2 = arith.constant 0 : i32
    return %arg0, %c0_i32, %c0_i32_0, %c0_i32_1 : i32, i32, i32, i32
  }
  func.func @transform_7(%arg0: i32, %arg1: i32, %arg2: memref<6xi32, #tpu.memory_space<smem>>) -> (i32, i32, i32) {
    %c3_i32 = arith.constant 3 : i32
    %0 = arith.muli %arg0, %c3_i32 : i32
    %1 = arith.addi %0, %arg1 : i32
    %c0_i32 = arith.constant 0 : i32
    %c0_i32_0 = arith.constant 0 : i32
    %c0_i32_1 = arith.constant 0 : i32
    return %1, %c0_i32, %c0_i32_0 : i32, i32, i32
  }
  func.func @transform_8(%arg0: i32, %arg1: i32, %arg2: memref<6xi32, #tpu.memory_space<smem>>) -> (i32, i32, i32) {
    %c3_i32 = arith.constant 3 : i32
    %0 = arith.muli %arg0, %c3_i32 : i32
    %1 = arith.addi %0, %arg1 : i32
    %c0_i32 = arith.constant 0 : i32
    %c0_i32_0 = arith.constant 0 : i32
    %c0_i32_1 = arith.constant 0 : i32
    return %1, %c0_i32, %c0_i32_0 : i32, i32, i32
  }
  func.func @transform_9(%arg0: i32, %arg1: i32, %arg2: memref<6xi32, #tpu.memory_space<smem>>) -> (i32, i32, i32) {
    %c3_i32 = arith.constant 3 : i32
    %0 = arith.muli %arg0, %c3_i32 : i32
    %1 = arith.addi %0, %arg1 : i32
    %c0_i32 = arith.constant 0 : i32
    %c0_i32_0 = arith.constant 0 : i32
    %c0_i32_1 = arith.constant 0 : i32
    return %1, %c0_i32, %c0_i32_0 : i32, i32, i32
  }
  func.func @transform_10(%arg0: i32, %arg1: i32, %arg2: memref<6xi32, #tpu.memory_space<smem>>) -> (i32, i32, i32) {
    %c3_i32 = arith.constant 3 : i32
    %0 = arith.muli %arg0, %c3_i32 : i32
    %1 = arith.addi %0, %arg1 : i32
    %c0_i32 = arith.constant 0 : i32
    %c0_i32_0 = arith.constant 0 : i32
    %c0_i32_1 = arith.constant 0 : i32
    return %1, %c0_i32, %c0_i32_0 : i32, i32, i32
  }
  func.func @transform_11(%arg0: i32, %arg1: i32, %arg2: memref<6xi32, #tpu.memory_space<smem>>) -> (i32, i32, i32) {
    %c0_i32 = arith.constant 0 : i32
    %c0_i32_0 = arith.constant 0 : i32
    %c0_i32_1 = arith.constant 0 : i32
    return %arg0, %c0_i32, %c0_i32_0 : i32, i32, i32
  }
}

</mosaic_0001>

<bundles_post_ra>
// kernel: tpu_custom_call.1
= control target key start
LH: loop header
LB: loop body
LE: loop exit
PB: predicated region body
PF: predicated region fallthrough
CT: control target
= control target key end

     0   :  { %s2997_s0 = inlined_call_operand.hbm [shape: s32[6], index: 0, kind: input, shape index: {}]   ;;  %s2998_s1 = inlined_call_operand.hbm [shape: f32[2,8,128], index: 1, kind: input, shape index: {}]   ;;  %s2999_s2 = inlined_call_operand.hbm [shape: f32[2,5,8,128], index: 2, kind: input, shape index: {}]   ;;  %s3000_s3 = inlined_call_operand.hbm [shape: f32[2,2,8,128], index: 3, kind: input, shape index: {}]   ;;  %s3001_s4 = inlined_call_operand.hbm [shape: s32[2,8,128], index: 4, kind: input, shape index: {}]   ;;  %s3002_s5 = inlined_call_operand.vmem [shape: s32[2,8,128], index: 5, kind: input, shape index: {}]   ;;  %s3003_s6 = inlined_call_operand.hbm [shape: s32[2,8,128], index: 6, kind: input, shape index: {}]   ;;  %s3004_s7 = inlined_call_operand.hbm [shape: f32[2,2,8,128], index: 7, kind: input, shape index: {}]   ;;  %s3005_s8 = inlined_call_operand.hbm [shape: bf16[6,8,128], index: 8, kind: output, shape index: {0}]   ;;  %s3006_s9 = inlined_call_operand.hbm [shape: bf16[6,8,128], index: 9, kind: output, shape index: {1}]   ;;  %s3007_s10 = inlined_call_operand.hbm [shape: bf16[6,8,128], index: 10, kind: output, shape index: {2}]   ;;  %s3008_s11 = inlined_call_operand.hbm [shape: f32[6,1,128], index: 11, kind: output, shape index: {3}]   ;;  %s3009_s12 = inlined_call_operand.hbm [shape: f32[2,1,128], index: 12, kind: output, shape index: {4}]  }
   0x1   :  { %3051 = sst [smem:[#allocation49_spill]] %s2998_s1  ;;  %s1703_s23 = scalar_lea.hbm %s2997_s0, 16 }
   0x2   :  { %3052 = sst [smem:[#allocation50_spill]] %s2999_s2  ;;  %p1704_p0 = scmp.ne.s32.totalorder %s2997_s0, %s1703_s23 }
   0x3   :  { %3053 = sst [smem:[#allocation51_spill]] %s3000_s3  ;;  %p1707_p1 = scmp.lt.u32.totalorder %s1703_s23, %s2997_s0 }
   0x4   :  { %3054 = sst [smem:[#allocation52_spill]] %s3001_s4 }
   0x5   :  { %3055 = sst [smem:[#allocation53_spill]] %s3002_s5  ;;  %p1709_p2 = pnand %p1707_p1, %p1704_p0 }
   0x6   :  { %3056 = sst [smem:[#allocation54_spill]] %s3003_s6 }
   0x7   :  { %3057 = sst [smem:[#allocation55_spill]] %s3004_s7 }
   0x8   :  { %3058 = sst [smem:[#allocation56_spill]] %s3005_s8 }
   0x9   :  { %3059 = sst [smem:[#allocation57_spill]] %s3006_s9 }
   0xa   :  { %3060 = sst [smem:[#allocation58_spill]] %s3007_s10 }
   0xb   :  { %3061 = sst [smem:[#allocation59_spill]] %s3008_s11 }
   0xc   :  { %3062 = sst [smem:[#allocation60_spill]] %s3009_s12 }
   0xd   :  { %1712 = shalt.err (!%p1709_p2)  }
   0xe   :  { %s2153_s28 = smov [#allocation7]  }
   0xf   :  { %19 = dma.hbm_to_smem %s2997_s0, 16, %s2153_s28, [#allocation6] }
  0x10   :  { %2075 = dma.done.wait [#allocation6], 16 }
  0x11   :  { %2076 = vsyncadd [#allocation6], 4294967280 }
  0x12   :  { %21 = sfence }
  0x13   :  { %22 = vsyncpa [#allocation9], 0 }
  0x14   :  { %23 = vsyncpa [#allocation12], 0 }
  0x15   :  { %25 = vsyncpa [#allocation12 + $0x1], 0 }
  0x16   :  { %26 = vsyncpa [#allocation15], 0 }
  0x17   :  { %28 = vsyncpa [#allocation15 + $0x1], 0 }
  0x18   :  { %29 = vsyncpa [#allocation18], 0 }
  0x19   :  { %31 = vsyncpa [#allocation18 + $0x1], 0 }
  0x1a   :  { %32 = vsyncpa [#allocation10], 0 }
  0x1b   :  { %34 = vsyncpa [#allocation10 + $0x1], 0 }
  0x1c   :  { %35 = vsyncpa [#allocation21], 0 }
  0x1d   :  { %37 = vsyncpa [#allocation21 + $0x1], 0 }
  0x1e   :  { %38 = vsyncpa [#allocation24], 0 }
  0x1f   :  { %40 = vsyncpa [#allocation24 + $0x1], 0  ;;  %s2248_s13 = smov 0   ;;  %s2250_s14 = smov 0  }
  0x20   :  { %s2252_s0 = smov 0   ;;  %s2254_s15 = smov 0  }
  0x21   :  { %s2256_s16 = smov 0   ;;  %s2258_s17 = smov 0  }
  0x22   :  { %s2260_s18 = smov 0   ;;  %s2262_s19 = smov 0  }
  0x23   :  { %s2264_s20 = smov 0   ;;  %s2266_s21 = smov 0  }
  0x24   :  { %s2268_s22 = smov 0  }
  0x25 LB: > { %3063 = sst [smem:[#allocation35_spill]] %s2111_s13  ;;  %s3010_s23 = sadd.s32 1, %s2143_s20  ;;  %s2151_s22 = sphi %s2268_s22, %s46_s22   ;;  %s2147_s21 = sphi %s2266_s21, %s3152_s21   ;;  %s2143_s20 = sphi %s2264_s20, %s3145_s20   ;;  %s2139_s19 = sphi %s2262_s19, %s3151_s19   ;;  %s2135_s18 = sphi %s2260_s18, %s3144_s18   ;;  %s2131_s17 = sphi %s2258_s17, %s3143_s17   ;;  %s2127_s16 = sphi %s2256_s16, %s3150_s16   ;;  %s2123_s15 = sphi %s2254_s15, %s3149_s15   ;;  %s2119_s0 = sphi %s2252_s0, %s3141_s0   ;;  %s2115_s14 = sphi %s2250_s14, %s3148_s14   ;;  %s2111_s13 = sphi %s2248_s13, %s3147_s13  }
  0x26   : > { %3064 = sst [smem:[#allocation36_spill]] %s2119_s0  ;;  %s58_s24 = sadd.s32 1, %s2147_s21 }
  0x27   : > { %3065 = sst [smem:[#allocation37_spill]] %s2131_s17  ;;  %p2307_p3 = scmp.ge.s32.totalorder %s3010_s23, 3 }
  0x28   : > { %3066 = sst [smem:[#allocation38_spill]] %s2135_s18  ;;  %s86_s26 = sadd.s32 1, %s2131_s17 }
  0x29   : > { %3067 = sst [smem:[#allocation39_spill]] %s2139_s19  ;;  %p3018_p4 = scmp.ne.s32.totalorder %s2131_s17, %s2127_s16 }
  0x2a   : > { %3068 = sst [smem:[#allocation40_spill]] %s2143_s20  ;;  %p94_p5 = scmp.eq.s32.totalorder %s2151_s22, 0 }
  0x2b   : > { %3069 = sst [smem:[#allocation41_spill]] %s2151_s22  ;;  %s3154_s24 = smov (!%p2307_p3, %s58_s24), %s2147_s21 }
  0x2c   : > { %s3070_s25 = scalar_select %p2307_p3, 1, 0 }
  0x2d   : > { %p95_p6 = por %p94_p5, %p3018_p4  ;;  %p60_p7 = scmp.ge.s32.totalorder %s3154_s24, 2 }
  0x2e   : > { %p1572_p8 = scmp.lt.s32.totalorder %s2151_s22, 6  ;;  %s2326_s28 = sand.u32 1, %s2131_s17  }
  0x2f   : > { %s3156_s24 = smov (%p60_p7, %s3154_s24), 0  ;;  %s1470_s30 = smul.u32 40, %s2326_s28 }
  0x30   : > { %3071 = sst [smem:[#allocation42_spill]] %s3156_s24  ;;  %s83_s29 = ssub.s32 %s2147_s21, %s3156_s24 }
  0x31   : > { %p84_p9 = scmp.eq.s32.totalorder %s83_s29, 0  ;;  %s1471_s23 = smul.u32 640, %s2147_s21 }
  0x32   : > { %p2332_p10 = pnand %p1572_p8, %p95_p6  ;;  %s3074_s2 = sld [smem:[#allocation50_spill]] }
  0x33   : > { %s2337_s10 = scalar_select %p84_p9, %s2131_s17, %s86_s26  }
  0x34   : > { %s3072_s12 = scalar_select %p2332_p10, 1, 0 }
  0x35   : > { %3073 = sst [smem:[#allocation43_spill]] %s2337_s10  ;;  %s416_s27 = scalar_lea.vmem [#allocation11], %s1470_s30 }
  0x36   : > { %s423_s29 = sshll.u32 %s416_s27, 4  ;;  %s3075_s18 = sand.u32 1, %s2151_s22   ;;  %s2344_s29 = int_to_ptr.vmem [resolvable:$true] %s423_s29 }
  0x37   : > { %s2348_s5 = scalar_lea.sflag [#allocation12], %s3075_s18  ;;  %p2354_p12 = pneg %p2332_p10 }
  0x38   : > { %s2342_s9 = scalar_lea.hbm %s3074_s2, %s1471_s23  ;;  %3076 = sst [smem:[#allocation44_spill]] %s2348_s5 }
  0x39   : > { %s1713_s19 = scalar_lea.hbm %s2342_s9, 640  ;;  %s1718_s23 = scalar_lea.hbm %s3074_s2, 1280 }
  0x3a   : > { %p1714_p11 = scmp.ne.s32.totalorder %s2342_s9, %s1713_s19  ;;  %p1719_p1 = scmp.lt.u32.totalorder %s2342_s9, %s3074_s2 }
  0x3b   : > { %s3077_s26 = scalar_select %p2354_p12, 1, 0 }
  0x3c   : > { %p1716_p13 = pnand %p2354_p12, %p1714_p11  ;;  %p1720_p2 = scmp.lt.u32.totalorder %s1718_s23, %s1713_s19 }
  0x3d   : > { %p1722_p6 = scmp.lt.u32.totalorder %s1713_s19, %s2342_s9 }
  0x3e   : > { %p1717_p0 = pneg %p1716_p13  ;;  %p1721_p5 = por %p1720_p2, %p1719_p1 }
  0x40   : > { %p1723_p7 = por %p1722_p6, %p1721_p5 }
  0x42   : > { %p1724_p8 = pnand %p1723_p7, %p1717_p0 }
  0x44   : > { %1727 = shalt.err (!%p1724_p8)
}
  0x45   : > { %s1728_s18 = scalar_lea.vmem %s2344_s29, 640  ;;  %s2154_s8 = smov [#allocation11]  }
  0x46   : > { %p1729_p9 = scmp.ne.s32.totalorder %s2344_s29, %s1728_s18  ;;  %s1733_s11 = sshll.u32 %s2154_s8, 4  ;;  %s1734_s11 = int_to_ptr.vmem [resolvable:$false] %s1733_s11 }
  0x47   : > { %s1735_s27 = scalar_lea.vmem %s1734_s11, 1280  ;;  %p1736_p4 = scmp.lt.s32.totalorder %s2344_s29, %s1734_s11 }
  0x48   : > { %p1731_p11 = pnand %p1729_p9, %p2354_p12  ;;  %p1737_p3 = scmp.lt.s32.totalorder %s1735_s27, %s1728_s18 }
  0x4a   : > { %p1732_p13 = pneg %p1731_p11  ;;  %p1738_p1 = por %p1737_p3, %p1736_p4 }
  0x4c   : > { %p1739_p2 = pnand %p1738_p1, %p1732_p13 }
  0x4e   : > { %1742 = shalt.err (!%p1739_p2)
}
  0x4f   : > { %s3022_s19 = smov 128   ;;  %s3024_s23 = smov 8  }
  0x50   : > { %1542 = dma.hbm_to_vmem [thread:$0]  (!%p2332_p10), %s2342_s9, 640, %s2344_s29, %s2348_s5, %s3022_s19, %s3022_s19, %s3024_s23  }
  0x51   : > { %s3026_s30 = sshll.u32 %s2326_s28, 3  ;;  %s1430_s18 = sshll.u32 %s2147_s21, 7 }
  0x52   : > { %s3078_s4 = sld [smem:[#allocation52_spill]]  ;;  %s458_s2 = scalar_lea.vmem [#allocation14], %s3026_s30 }
  0x53   : > { %s465_s10 = sshll.u32 %s458_s2, 4  ;;  %s3079_s6 = sld [smem:[#allocation54_spill]]  ;;  %s2390_s10 = int_to_ptr.vmem [resolvable:$true] %s465_s10 }
  0x54   : > { %s3080_s29 = sand.u32 1, %s2151_s22  }
  0x55   : > { %s2399_s19 = scalar_lea.sflag [#allocation15], %s3080_s29 }
  0x58   : > { %s2386_s27 = scalar_lea.hbm %s3078_s4, %s1430_s18  ;;  %s1748_s30 = scalar_lea.hbm %s3078_s4, 256 }
  0x59   : > { %s2395_s9 = scalar_lea.hbm %s3079_s6, %s1430_s18  ;;  %s1743_s8 = scalar_lea.hbm %s2386_s27, 128 }
  0x5a   : > { %p1744_p3 = scmp.ne.s32.totalorder %s2386_s27, %s1743_s8  ;;  %p1749_p5 = scmp.lt.u32.totalorder %s2386_s27, %s3078_s4 }
  0x5b   : > { %p1750_p6 = scmp.lt.u32.totalorder %s1748_s30, %s1743_s8  ;;  %p1752_p8 = scmp.lt.u32.totalorder %s1743_s8, %s2386_s27 }
  0x5c   : > { %p1746_p4 = pnand %p1744_p3, %p2354_p12 }
  0x5d   : > { %p1751_p7 = por %p1750_p6, %p1749_p5 }
  0x5e   : > { %p1747_p0 = pneg %p1746_p4 }
  0x5f   : > { %p1753_p9 = por %p1752_p8, %p1751_p7 }
  0x61   : > { %p1754_p11 = pnand %p1753_p9, %p1747_p0 }
  0x63   : > { %1757 = shalt.err (!%p1754_p11)
}
  0x64   : > { %s1758_s1 = scalar_lea.vmem %s2390_s10, 128  ;;  %s2157_s7 = smov [#allocation14]  }
  0x65   : > { %p1759_p13 = scmp.ne.s32.totalorder %s2390_s10, %s1758_s1  ;;  %s1763_s23 = sshll.u32 %s2157_s7, 4  ;;  %s1764_s23 = int_to_ptr.vmem [resolvable:$false] %s1763_s23 }
  0x66   : > { %s1765_s5 = scalar_lea.vmem %s1764_s23, 256  ;;  %p1766_p3 = scmp.lt.s32.totalorder %s2390_s10, %s1764_s23 }
  0x67   : > { %p1761_p1 = pnand %p1759_p13, %p2354_p12  ;;  %p1767_p4 = scmp.lt.s32.totalorder %s1765_s5, %s1758_s1 }
  0x69   : > { %p1762_p2 = pneg %p1761_p1  ;;  %p1768_p5 = por %p1767_p4, %p1766_p3 }
  0x6b   : > { %p1769_p6 = pnand %p1768_p5, %p1762_p2 }
  0x6d   : > { %1772 = shalt.err (!%p1769_p6)
}
  0x6e   : > { %1548 = dma.hbm_to_vmem [thread:$0]  (!%p2332_p10), %s2386_s27, 128, %s2390_s10, %s2399_s19  }
  0x6f   : > { %s2424_s30 = sadd.s32 4294967295, %s2151_s22   ;;  %s3031_s18 = sadd.s32 4294967294, %s2151_s22  }
  0x70   : > { %s3081_s29 = sadd.s32 1, %s2143_s20  ;;  %p3082_p0 = scmp.ne.s32.totalorder %s3070_s25, 0 }
  0x71   : > { %p99_p7 = scmp.ne.s32.totalorder %s2127_s16, %s2123_s15  ;;  %p3028_p8 = scmp.eq.s32.totalorder %s2424_s30, 0 }
  0x72   : > { %s3158_s29 = smov (%p3082_p0, %s3081_s29), 0  ;;  %s239_s8 = smul.u32 3, %s2147_s21 }
  0x73   : > { %3083 = sst [smem:[#allocation45_spill]] %s3158_s29  ;;  %s246_s10 = sadd.s32 1, %s2119_s0 }
  0x74   : > { %p2443_p9 = por %p3028_p8, %p99_p7  ;;  %s241_s25 = smul.u32 3, %s3156_s24 }
  0x75   : > { %s240_s11 = sadd.s32 %s2143_s20, %s239_s8  ;;  %p256_p11 = scmp.ne.s32.totalorder %s2119_s0, %s2115_s14 }
  0x76   : > { %s3084_s27 = scalar_select %p2443_p9, 1, 0 }
  0x77   : > { %s242_s2 = sadd.s32 %s241_s25, %s3158_s29  ;;  %p257_p13 = scmp.eq.s32.totalorder %s2424_s30, 5 }
  0x78   : > { %s243_s1 = ssub.s32 %s240_s11, %s242_s2  ;;  %p262_p1 = scmp.ne.s32.totalorder %s2115_s14, %s2111_s13 }
  0x79   : > { %p244_p2 = scmp.eq.s32.totalorder %s243_s1, 0  ;;  %p2455_p3 = por %p257_p13, %p256_p11 }
  0x7a   : > { %p263_p4 = scmp.eq.s32.totalorder %s3031_s18, 5  ;;  %p3086_p5 = scmp.ne.s32.totalorder %s2131_s17, %s2127_s16 }
  0x7b   : > { %s3085_s7 = scalar_select %p2455_p3, 1, 0 }
  0x7c   : > { %p2464_p6 = por %p257_p13, %p3086_p5  ;;  %p2471_p0 = por %p263_p4, %p262_p1 }
  0x7d   : > { %s2469_s5 = scalar_select %p244_p2, %s2119_s0, %s246_s10  }
  0x7e   : > { %s3087_s23 = scalar_select %p2464_p6, 1, 0 }
  0x7f   : > { %3088 = sst [smem:[#allocation46_spill]] %s2469_s5  ;;  %p2478_p11 = por %p263_p4, %p99_p7 }
  0x80   : > { %s3089_s8 = scalar_select %p2471_p0, 1, 0 }
  0x81   : > { %s3091_s25 = scalar_select %p2478_p11, 1, 0 }
  0x82   : > { %3090 = sst [smem:[#allocation47_spill]] %s3089_s8  ;;  %p1422_p8 = scmp.ge.s32.totalorder %s2151_s22, 1 }
  0x83   : > { %3092 = sst [smem:[#allocation48_spill]] %s3091_s25  ;;  %p386_p3 = scmp.lt.s32.totalorder %s2151_s22, 7 }
  0x84   : > { %s2158_s2 = smov [#allocation8]   ;;  %s3037_s1 = sshll.u32 %s2326_s28, 4 }
  0x85   : > { %p2484_p9 = pnand %p1422_p8, %p386_p3  ;;  %s398_s10 = sshll.u32 %s2158_s2, 4  ;;  %s2488_s10 = int_to_ptr.vmem [resolvable:$true] %s398_s10 }
  0x86   : > { %s1468_s15 = sshll.u32 %s2147_s21, 8  ;;  %s437_s18 = scalar_lea.vmem [#allocation13], %s3037_s1 }
  0x87   : > { %s3093_s11 = scalar_select %p2484_p9, 1, 0 }
  0x88   : > { %p1535_p13 = pneg %p2484_p9  ;;  %s444_s4 = sshll.u32 %s437_s18, 4  ;;  %s2509_s4 = int_to_ptr.vmem [resolvable:$true] %s444_s4 }
  0x89   : > { %p3094_p7 = scmp.eq.s32.totalorder %s2424_s30, 0  ;;  %s3096_s3 = sld [smem:[#allocation51_spill]] }
  0x8a   : > { %s3097_s17 = sshll.u32 %s2326_s28, 3  ;;  %s3098_s25 = sld [smem:[#allocation49_spill]] }
  0x8b   : > { %p2498_p1 = pnand %p1535_p13, %p3094_p7  ;;  %s483_s5 = scalar_lea.vmem [#allocation16], %s3097_s17 }
  0x8c   : > { %s490_s0 = sshll.u32 %s483_s5, 4  ;;  %s2513_s0 = int_to_ptr.vmem [resolvable:$true] %s490_s0 }
  0x8d   : > { %p1775_p2 = pneg %p2498_p1 }
  0x8f   : > { %s2507_s2 = scalar_lea.hbm %s3096_s3, %s1468_s15 }
  0x90   : > { %s1773_s8 = scalar_lea.hbm %s3098_s25, 256 }
  0x91   : > { %p1774_p8 = scmp.ne.s32.totalorder %s3098_s25, %s1773_s8  ;;  %p1780_p5 = scmp.lt.u32.totalorder %s1773_s8, %s3098_s25 }
  0x93   : > { %p1776_p3 = pnand %p1775_p2, %p1774_p8 }
  0x95   : > { %p1777_p4 = pneg %p1776_p3 }
  0x97   : > { %p1782_p13 = pnand %p1780_p5, %p1777_p4 }
  0x99   : > { %1785 = shalt.err (!%p1782_p13)
}
  0x9a   : > { %s1786_s17 = scalar_lea.vmem %s2488_s10, 256  ;;  %p1794_p6 = scmp.lt.s32.totalorder %s2488_s10, %s2488_s10 }
  0x9b   : > { %p1787_p7 = scmp.ne.s32.totalorder %s2488_s10, %s1786_s17  ;;  %p1795_p9 = scmp.lt.s32.totalorder %s1786_s17, %s1786_s17 }
  0x9d   : > { %p1789_p11 = pnand %p1787_p7, %p1775_p2  ;;  %p1796_p10 = por %p1795_p9, %p1794_p6 }
  0x9f   : > { %p1790_p0 = pneg %p1789_p11 }
  0xa1   : > { %p1797_p12 = pnand %p1796_p10, %p1790_p0 }
  0xa3   : > { %1800 = shalt.err (!%p1797_p12)
}
  0xa4   : > { %s3099_s13 = smov 8   ;;  %s3100_s22 = smov 128  }
  0xa5   : > { %1538 = dma.hbm_to_vmem [thread:$0]  (!%p2498_p1), %s3098_s25, 256, %s2488_s10, [#allocation9], %s3100_s22, %s3100_s22, %s3099_s13  }
  0xa6   : > { %s1801_s1 = scalar_lea.hbm %s2507_s2, 256  ;;  %p3101_p9 = scmp.ne.s32.totalorder %s3077_s26, 0 }
  0xa7   : > { %p1802_p11 = scmp.ne.s32.totalorder %s2507_s2, %s1801_s1  ;;  %s1806_s20 = scalar_lea.hbm %s3096_s3, 512 }
  0xa8   : > { %p1807_p6 = scmp.lt.u32.totalorder %s2507_s2, %s3096_s3  ;;  %p1808_p0 = scmp.lt.u32.totalorder %s1806_s20, %s1801_s1 }
  0xa9   : > { %p1804_p10 = pnand %p1802_p11, %p3101_p9  ;;  %p1810_p2 = scmp.lt.u32.totalorder %s1801_s1, %s2507_s2 }
  0xaa   : > { %p1809_p8 = por %p1808_p0, %p1807_p6 }
  0xab   : > { %p1805_p12 = pneg %p1804_p10 }
  0xac   : > { %p1811_p3 = por %p1810_p2, %p1809_p8 }
  0xae   : > { %p1812_p4 = pnand %p1811_p3, %p1805_p12 }
  0xb0   : > { %1815 = shalt.err (!%p1812_p4)
}
  0xb1   : > { %s1816_s10 = scalar_lea.vmem %s2509_s4, 256  ;;  %s2159_s5 = smov [#allocation13]  }
  0xb2   : > { %p1817_p1 = scmp.ne.s32.totalorder %s2509_s4, %s1816_s10  ;;  %s1821_s8 = sshll.u32 %s2159_s5, 4  ;;  %s1822_s8 = int_to_ptr.vmem [resolvable:$false] %s1821_s8 }
  0xb3   : > { %s1823_s18 = scalar_lea.vmem %s1822_s8, 512  ;;  %p1824_p7 = scmp.lt.s32.totalorder %s2509_s4, %s1822_s8 }
  0xb4   : > { %p1819_p5 = pnand %p1817_p1, %p3101_p9  ;;  %p1825_p11 = scmp.lt.s32.totalorder %s1823_s18, %s1816_s10 }
  0xb6   : > { %p1820_p13 = pneg %p1819_p5  ;;  %p1826_p10 = por %p1825_p11, %p1824_p7 }
  0xb8   : > { %p1827_p6 = pnand %p1826_p10, %p1820_p13 }
  0xba   : > { %1830 = shalt.err (!%p1827_p6)
}
  0xbb   : > { %p3102_p12 = scmp.ne.s32.totalorder %s3072_s12, 0  ;;  %s3103_s1 = sld [smem:[#allocation44_spill]] }
  0xbc   : > { %s1831_s24 = scalar_lea.hbm %s2395_s9, 128  ;;  %s1836_s17 = scalar_lea.hbm %s3079_s6, 256 }
  0xbd   : > { %p1832_p0 = scmp.ne.s32.totalorder %s2395_s9, %s1831_s24  ;;  %p1837_p3 = scmp.lt.u32.totalorder %s2395_s9, %s3079_s6 }
  0xbe   : > { %p1838_p4 = scmp.lt.u32.totalorder %s1836_s17, %s1831_s24  ;;  %p1840_p5 = scmp.lt.u32.totalorder %s1831_s24, %s2395_s9 }
  0xbf   : > { %p1834_p8 = pnand %p1832_p0, %p3101_p9 }
  0xc0   : > { %p1839_p1 = por %p1838_p4, %p1837_p3 }
  0xc1   : > { %1545 = dma.hbm_to_vmem [thread:$0]  (!%p3102_p12), %s2507_s2, 256, %s2509_s4, %s3103_s1, %s3100_s22, %s3100_s22, %s3099_s13  }
  0xc2   : > { %p1835_p2 = pneg %p1834_p8  ;;  %p1841_p13 = por %p1840_p5, %p1839_p1 }
  0xc4   : > { %p1842_p7 = pnand %p1841_p13, %p1835_p2 }
  0xc6   : > { %1845 = shalt.err (!%p1842_p7)
}
  0xc7   : > { %s1846_s4 = scalar_lea.vmem %s2513_s0, 128  ;;  %s2160_s2 = smov [#allocation16]  }
  0xc8   : > { %p1847_p11 = scmp.ne.s32.totalorder %s2513_s0, %s1846_s4  ;;  %s1851_s8 = sshll.u32 %s2160_s2, 4  ;;  %s1852_s8 = int_to_ptr.vmem [resolvable:$false] %s1851_s8 }
  0xc9   : > { %s1853_s18 = scalar_lea.vmem %s1852_s8, 256  ;;  %p1854_p0 = scmp.lt.s32.totalorder %s2513_s0, %s1852_s8 }
  0xca   : > { %p1849_p10 = pnand %p1847_p11, %p3101_p9  ;;  %p1855_p8 = scmp.lt.s32.totalorder %s1853_s18, %s1846_s4 }
  0xcc   : > { %p1850_p6 = pneg %p1849_p10  ;;  %p1856_p3 = por %p1855_p8, %p1854_p0 }
  0xce   : > { %p1857_p4 = pnand %p1856_p3, %p1850_p6 }
  0xd0   : > { %1860 = shalt.err (!%p1857_p4)
}
  0xd1   : > { %1551 = dma.hbm_to_vmem [thread:$0]  (!%p3102_p12), %s2395_s9, 128, %s2513_s0, %s2399_s19  }
  0xd2   : > { %s3104_s20 = sld [smem:[#allocation55_spill]]  ;;  %s3106_s10 = sshll.u32 %s2326_s28, 4 }
  0xd3   : > { %s501_s5 = scalar_lea.vmem [#allocation17], %s3106_s10  ;;  %s498_s2 = scalar_lea.sflag [#allocation18], %s2326_s28 }
  0xd4   : > { %s508_s4 = sshll.u32 %s501_s5, 4  ;;  %s2595_s4 = int_to_ptr.vmem [resolvable:$true] %s508_s4 }
  0xd8   : > { %s3105_s29 = smov %s3104_s20  ;;  %s2591_s17 = scalar_lea.hbm %s3104_s20, %s1468_s15 }
  0xd9   : > { %s1861_s8 = scalar_lea.hbm %s2591_s17, 256  ;;  %s1866_s9 = scalar_lea.hbm %s3105_s29, 512 }
  0xda   : > { %p1862_p2 = scmp.ne.s32.totalorder %s2591_s17, %s1861_s8  ;;  %p1867_p13 = scmp.lt.u32.totalorder %s2591_s17, %s3105_s29 }
  0xdb   : > { %p1868_p7 = scmp.lt.u32.totalorder %s1866_s9, %s1861_s8  ;;  %p1870_p10 = scmp.lt.u32.totalorder %s1861_s8, %s2591_s17 }
  0xdc   : > { %p1864_p1 = pnand %p1862_p2, %p3101_p9 }
  0xdd   : > { %p1869_p11 = por %p1868_p7, %p1867_p13 }
  0xde   : > { %p1865_p5 = pneg %p1864_p1 }
  0xdf   : > { %p1871_p6 = por %p1870_p10, %p1869_p11 }
  0xe1   : > { %p1872_p0 = pnand %p1871_p6, %p1865_p5 }
  0xe3   : > { %1875 = shalt.err (!%p1872_p0)
}
  0xe4   : > { %s1876_s1 = scalar_lea.vmem %s2595_s4, 256  ;;  %s2161_s24 = smov [#allocation17]  }
  0xe5   : > { %p1877_p8 = scmp.ne.s32.totalorder %s2595_s4, %s1876_s1  ;;  %s1881_s20 = sshll.u32 %s2161_s24, 4  ;;  %s1882_s20 = int_to_ptr.vmem [resolvable:$false] %s1881_s20 }
  0xe6   : > { %s1883_s10 = scalar_lea.vmem %s1882_s20, 512  ;;  %p1884_p2 = scmp.lt.s32.totalorder %s2595_s4, %s1882_s20 }
  0xe7   : > { %p1879_p3 = pnand %p1877_p8, %p3101_p9  ;;  %p1885_p1 = scmp.lt.s32.totalorder %s1883_s10, %s1876_s1 }
  0xe9   : > { %p1880_p4 = pneg %p1879_p3  ;;  %p1886_p13 = por %p1885_p1, %p1884_p2 }
  0xeb   : > { %p1887_p7 = pnand %p1886_p13, %p1880_p4 }
  0xed   : > { %1890 = shalt.err (!%p1887_p7)
}
  0xee   : > { %1554 = dma.hbm_to_vmem [thread:$0]  (!%p3102_p12), %s2591_s17, 256, %s2595_s4, %s498_s2, %s3100_s22, %s3100_s22, %s3099_s13  }
  0xef   : > { %p3107_p9 = scmp.ne.s32.totalorder %s3093_s11, 0 }
  0xf0   : > { %p3108_p5 = scmp.eq.s32.totalorder (!%p3107_p9), %s2424_s30, 0 }
  0xf1   : > { %520 = sbr.rel (%p3107_p9) target bundleno = 1423 (0x58f), region = 48 }
  0xf8   : > { %2078 = dma.done.wait (%p3108_p5), [#allocation9], 256   ;;  %p3109_p11 = pmov %p3108_p5 }
  0xf9   : > { %s2631_s12 = sand.u32 1, %s2424_s30   ;;  %s2634_s26 = sand.u32 1, %s2127_s16  }
  0xfa   : > { %2080 = vsyncadd (%p3109_p11), [#allocation9], 4294967040  ;;  %s1472_s28 = smul.u32 40, %s2634_s26  ;;  %s527_s13 = scalar_lea.sflag [#allocation12], %s2631_s12 }
  0xfb   : > { %p3110_p12 = scmp.ne.s32.totalorder %s3084_s27, 0 }
  0xfc   : > { %s2638_s22 = scalar_lea.vmem [#allocation11], %s1472_s28 }
  0xfd   : > { %2082 = dma.done.wait (%p3110_p12), %s527_s13, 896  }
  0xfe   : > { %2084 = vsyncadd (%p3110_p12), %s527_s13, 4294966400  ;;  %s1438_s11 = sshll.u32 %s2634_s26, 4  ;;  %s1439_s30 = sshll.u32 %s2634_s26, 3 }
  0xff   : > { %s2646_s17 = scalar_lea.vmem [#allocation13], %s1438_s11  ;;  %s545_s5 = scalar_lea.sflag [#allocation15], %s2631_s12 }
 0x100   : > { %s548_s4 = scalar_lea.vmem [#allocation14], %s1439_s30 }
 0x101   : > { %2086 = dma.done.wait (%p3110_p12), %s545_s5, 256  }
 0x102   : > { %2088 = vsyncadd (%p3110_p12), %s545_s5, 4294967040  ;;  %s2653_s2 = scalar_lea.vmem [#allocation16], %s1439_s30  ;;  %s563_s8 = scalar_lea.sflag [#allocation18], %s2634_s26 }
 0x103   : > { %s2656_s0 = scalar_lea.vmem [#allocation17], %s1438_s11 }
 0x104   : > { %2090 = dma.done.wait (%p3110_p12), %s563_s8, 256  }
 0x105   : > { %2092 = vsyncadd (%p3110_p12), %s563_s8, 4294967040  ;;  %s3111_s19 = sld [smem:[#allocation39_spill]]  ;;  %s2663_s9 = sand.u32 1, %s2115_s14  }
 0x106   : > { %s2666_s15 = sshll.u32 %s2663_s9, 2  ;;  %s3112_s24 = sld [smem:[#allocation53_spill]] }
 0x107   : > { %s2679_s28 = scalar_lea.vmem [#allocation20], %s2666_s15  ;;  %s3050_s13 = scalar_lea.vmem [#allocation22], %s2666_s15 }
 0x108   : > { %s3049_s30 = scalar_lea.vmem [#allocation25], %s2634_s26  ;;  %s3113_s5 = sld [smem:[#allocation38_spill]] }
 0x10b   : > { %p647_p10 = scmp.lt.s32.totalorder %s3111_s19, 1 }
 0x10d   : > { %s3160_s19 = smov (!%p647_p10, %s3111_s19), 1 }
 0x10e   : > { %s1445_s18 = sshll.u32 %s3160_s19, 3  ;;  %p1446_p6 = scmp.ne.s32.totalorder %s3113_s5, 0 }
 0x10f   : > { %s2675_s20 = scalar_lea.vmem %s3112_s24, %s1445_s18  ;;  %v668_v0 = vld [vmem:[%s2638_s22 + $0x20] sm:$0xff] (!%p1446_p6)  ;;  %v708_v4 = vld [vmem:[%s548_s4] sm:$0xff] (!%p1446_p6)  ;;  %v2162_v6 = vmov (!%p1446_p6), 0.0   ;;  %v665_v11 = vld [vmem:[%s2638_s22 + $0x8] sm:$0xff] (!%p1446_p6)  ;;  %v732_v48 = vlaneseq (!%p1446_p6) }
 0x110   : > { %663 = sbr.rel (%p1446_p6) target bundleno = 513 (0x201), region = 76  ;;  %v1449_v1 = vmul.f32 (!%p1446_p6), -1.442695, %v668_v0  ;;  %vm709_vm0 = vcmp.eq.s32.totalorder (!%p1446_p6), %v708_v4, 0  ;;  %v664_v10 = vld [vmem:[%s2638_s22] sm:$0xff] (!%p1446_p6)  ;;  %v666_v12 = vld [vmem:[%s2638_s22 + $0x10] sm:$0xff] (!%p1446_p6) }
 0x111   : > { %v1450_v7 = vsel (!%p1446_p6), %vm709_vm0, 1.0, %v2162_v6  ;;  %v667_v13 = vld [vmem:[%s2638_s22 + $0x18] sm:$0xff] (!%p1446_p6)  ;;  %v1447_v14 = vmul.f32 (!%p1446_p6), -1.442695, %v666_v12  ;;  %v671_v18 = vld [vmem:[#allocation8] sm:$0xff] (!%p1446_p6)  ;;  %v733_v49 = vand.u32 (!%p1446_p6), 127, %v732_v48 }
 0x112   : > { %1671 = vpow2.f32 (!%p1446_p6), %v1449_v1  ;;  %v1448_v15 = vmul.f32 (!%p1446_p6), -1.442695, %v667_v13  ;;  %v700_v16 = vld [vmem:[%s2646_s17] sm:$0xff] (!%p1446_p6)  ;;  %v701_v17 = vld [vmem:[%s2646_s17 + $0x8] sm:$0xff] (!%p1446_p6) }
 0x113   : > { %v672_v19 = vld [vmem:[#allocation8 + $0x8] sm:$0xff] (!%p1446_p6)  ;;  %vm734_vm1 = vcmp.eq.s32.totalorder (!%p1446_p6), %v733_v49, 0  ;;  %vm737_vm2 = vcmp.eq.s32.totalorder (!%p1446_p6), %v733_v49, 1 }
 0x11c   : > { %v1672_v2 = vpop.eup %1671 }
 0x11d   : > { %v688_v3 = vadd.f32 1.0, %v1672_v2 }
 0x11f   : > { %1673 = vrcp.f32 %v688_v3 }
 0x120   : > { %1675 = vtanh.f32 %v664_v10 }
 0x121   : > { %1677 = vtanh.f32 %v665_v11 }
 0x122   : > { %1679 = vpow2.f32 %v1447_v14 }
 0x123   : > { %1681 = vpow2.f32 %v1448_v15 }
 0x124   : > { %1683 = vtanh.f32 %v700_v16 }
 0x125   : > { %1685 = vtanh.f32 %v701_v17 }
 0x129   : > { %v1674_v5 = vpop.eup %1673 }
 0x12a   : > { %v712_v8 = vmul.f32 %v1674_v5, %v1674_v5  ;;  %697 = vst [vmem:[#allocation4] sm:$0xff] %v1674_v5  ;;  %v1676_v20 = vpop.eup %1675 }
 0x12b   : > { %v1678_v21 = vpop.eup %1677  ;;  %v673_v22 = vadd.f32 %v1676_v20, %v671_v18 }
 0x12c   : > { %v713_v9 = vmul.f32 %v1450_v7, %v712_v8  ;;  %v1680_v23 = vpop.eup %1679  ;;  %v674_v24 = vadd.f32 %v1678_v21, %v672_v19 }
 0x12d   : > { %v1682_v25 = vpop.eup %1681  ;;  %675 = vst [vmem:[#allocation2] sm:$0xff] %v673_v22  ;;  %v686_v26 = vadd.f32 1.0, %v1680_v23 }
 0x12e   : > { %714 = vadd.xlane.f32.xlu0 %v713_v9  ;;  %v1684_v27 = vpop.eup %1683  ;;  %676 = vst [vmem:[#allocation2 + $0x8] sm:$0xff] %v674_v24  ;;  %v687_v28 = vadd.f32 1.0, %v1682_v25 }
 0x12f   : > { %v1686_v29 = vpop.eup %1685  ;;  %1687 = vrcp.f32 %v686_v26  ;;  %v704_v30 = vsub.f32 %v671_v18, %v1684_v27 }
 0x130   : > { %1689 = vrcp.f32 %v687_v28  ;;  %v705_v31 = vsub.f32 %v672_v19, %v1686_v29 }
 0x131   : > { %706 = vst [vmem:[#allocation5] sm:$0xff] %v704_v30 }
 0x132   : > { %723 = vadd.xlane.f32.xlu0 %v1450_v7  ;;  %707 = vst [vmem:[#allocation5 + $0x8] sm:$0xff] %v705_v31 }
 0x139   : > { %v1688_v32 = vpop.eup %1687 }
 0x13a   : > { %v1690_v33 = vpop.eup %1689  ;;  %695 = vst [vmem:[#allocation3] sm:$0xff] %v1688_v32 }
 0x13b   : > { %696 = vst [vmem:[#allocation3 + $0x8] sm:$0xff] %v1690_v33 }
 0x1bb   : > { %v715_v34 = vpop.xlane.xlu0 %714 }
 0x1bc   : > { %v716_v35 = vrot.slane %v715_v34, 4 }
 0x1be   : > { %v717_v36 = vadd.f32 %v716_v35, %v715_v34 }
 0x1bf   : > { %v724_v37 = vpop.xlane.xlu0 %723 }
 0x1c0   : > { %v718_v38 = vrot.slane %v717_v36, 2  ;;  %v725_v39 = vrot.slane %v724_v37, 4 }
 0x1c2   : > { %v726_v40 = vadd.f32 %v725_v39, %v724_v37  ;;  %v719_v41 = vadd.f32 %v718_v38, %v717_v36 }
 0x1c4   : > { %v727_v42 = vrot.slane %v726_v40, 2  ;;  %v720_v43 = vrot.slane %v719_v41, 1 }
 0x1c6   : > { %v728_v44 = vadd.f32 %v727_v42, %v726_v40  ;;  %v721_v45 = vadd.f32 %v720_v43, %v719_v41 }
 0x1c8   : > { %1473 = vpush %v721_v45  ;;  %v729_v46 = vrot.slane %v728_v44, 1 }
 0x1ca   : > { %v730_v47 = vadd.f32 %v729_v46, %v728_v44 }
 0x1cc   : > { %1475 = vpush %v730_v47 }
 0x1f9   : > { %s1474_s22 = spop %1473 }
 0x1fa   : > { %v735_v50 = vstv %s1474_s22 }
 0x1fb   : > { %v736_v51 = vsel %vm734_vm1, %v735_v50, 0.0 }
 0x1fd   : > { %s1476_s17 = spop %1475 }
 0x1fe   : > { %v738_v52 = vstv %s1476_s17 }
 0x1ff   : > { %v739_v53 = vsel %vm737_vm2, %v738_v52, %v736_v51 }
 0x200   : > { %740 = vst [vmem:[%s3049_s30] sm:$0x1] %v739_v53 }
 0x201 PF: > { %s3114_s4 = sld [smem:[#allocation39_spill]]  ;;  %s3115_s8 = sld [smem:[#allocation38_spill]]  ;;  %v749_v54 = vld [vmem:[%s2653_s2] sm:$0xff]  ;;  %v2163_v57 = vmov 0.0   ;;  %v2701_v59 = vld [vmem:[#allocation8] sm:$0xff]  ;;  %v2705_v61 = vld [vmem:[#allocation8 + $0x8] sm:$0xff] }
 0x202   : > { %vm750_vm3 = vcmp.ne.s32.totalorder %v749_v54, 0  ;;  %v744_v55 = vld [vmem:[%s2675_s20] sm:$0xff]  ;;  %v2726_v5 = vld [vmem:[#allocation3 + $0x8] sm:$0xff]  ;;  %s2164_s1 = smov 1.0  }
 0x203   : > { %v1452_v58 = vsel %vm750_vm3, 1.0, %v2163_v57  ;;  %v2722_v3 = vld [vmem:[#allocation3] sm:$0xff] }
 0x207   : > { %s741_s19 = smul.u32 3, %s3114_s4  ;;  %p1455_p4 = scmp.ge.s32.totalorder %s3114_s4, 1 }
 0x209   : > { %s2696_s18 = sadd.s32 %s3115_s8, %s741_s19 }
 0x20a   : > { %s743_s27 = sld [smem:[#allocation7 + %s2696_s18]] }
 0x210   : > { %v745_v56 = vstv %s743_s27 }
 0x211   : > { %vm746_vm4 = vcmp.eq.s32.totalorder %v744_v55, %v745_v56 }
 0x212   : > { %v2703_v60 = vsel %vm746_vm4, 1.0, %v2163_v57 }
 0x213   : > { %754 = vadd.xlane.f32.xlu0 %v2703_v60  ;;  %v939_v62 = vpack.c.bf16 %v2703_v60, %v2703_v60  ;;  %v2711_v63 = vmul.f32 %v1452_v58, %v2703_v60  ;;  %v795_v0 = vmul.f32 %v2703_v60, %v2701_v59  ;;  %v824_v1 = vmul.f32 %v2703_v60, %v2705_v61 }
 0x214   : > { %v842_v6 = vmul.f32 %v2703_v60, %v2722_v3  ;;  %v856_v7 = vmul.f32 %v2703_v60, %v2726_v5 }
 0x215   : > { %940 = vst [vmem:[%s3050_s13] sm:$0xf] %v939_v62  ;;  %796 = vadd.xlane.f32.xlu1 %v795_v0  ;;  %v810_v2 = vmul.f32 %v2705_v61, %v2711_v63  ;;  %v781_v4 = vmul.f32 %v2701_v59, %v2711_v63 }
 0x217   : > { %763 = vadd.xlane.f32.xlu0 %v2711_v63 }
 0x219   : > { %825 = vadd.xlane.f32.xlu1 %v824_v1 }
 0x21b   : > { %811 = vadd.xlane.f32.xlu0 %v810_v2 }
 0x21d   : > { %782 = vadd.xlane.f32.xlu1 %v781_v4 }
 0x21f   : > { %843 = vadd.xlane.f32.xlu0 %v842_v6 }
 0x221   : > { %857 = vadd.xlane.f32.xlu1 %v856_v7 }
 0x2a0   : > { %v755_v8 = vpop.xlane.xlu0 %754 }
 0x2a1   : > { %v756_v9 = vrot.slane %v755_v8, 4 }
 0x2a2   : > { %v797_v10 = vpop.xlane.xlu1 %796 }
 0x2a3   : > { %v757_v11 = vadd.f32 %v756_v9, %v755_v8  ;;  %v798_v32 = vrot.slane %v797_v10, 4 }
 0x2a4   : > { %v764_v12 = vpop.xlane.xlu0 %763 }
 0x2a5   : > { %v758_v13 = vrot.slane %v757_v11, 2  ;;  %v765_v14 = vrot.slane %v764_v12, 4  ;;  %v799_v37 = vadd.f32 %v798_v32, %v797_v10 }
 0x2a6   : > { %v826_v15 = vpop.xlane.xlu1 %825 }
 0x2a7   : > { %v766_v16 = vadd.f32 %v765_v14, %v764_v12  ;;  %v759_v17 = vadd.f32 %v758_v13, %v757_v11  ;;  %v827_v36 = vrot.slane %v826_v15, 4  ;;  %v800_v42 = vrot.slane %v799_v37, 2 }
 0x2a8   : > { %v812_v31 = vpop.xlane.xlu0 %811 }
 0x2a9   : > { %v767_v18 = vrot.slane %v766_v16, 2  ;;  %v760_v19 = vrot.slane %v759_v17, 1  ;;  %v813_v34 = vrot.slane %v812_v31, 4  ;;  %v828_v41 = vadd.f32 %v827_v36, %v826_v15  ;;  %v907_v36 = vld [vmem:[#allocation2] sm:$0xff] }
 0x2aa   : > { %v783_v20 = vpop.xlane.xlu1 %782  ;;  %v801_v50 = vadd.f32 %v800_v42, %v799_v37 }
 0x2ab   : > { %v761_v21 = vadd.f32 %v760_v19, %v759_v17  ;;  %v768_v22 = vadd.f32 %v767_v18, %v766_v16  ;;  %v784_v23 = vrot.slane %v783_v20, 4  ;;  %v814_v40 = vadd.f32 %v813_v34, %v812_v31 }
 0x2ac   : > { %v844_v33 = vpop.xlane.xlu0 %843  ;;  %v829_v48 = vrot.slane %v828_v41, 2  ;;  %v802_v54 = vrot.slane %v801_v50, 1 }
 0x2ad   : > { %1477 = vpush %v761_v21  ;;  %v769_v24 = vrot.slane %v768_v22, 1  ;;  %v785_v25 = vadd.f32 %v784_v23, %v783_v20  ;;  %v845_v38 = vrot.slane %v844_v33, 4  ;;  %v815_v47 = vrot.slane %v814_v40, 2 }
 0x2ae   : > { %v858_v35 = vpop.xlane.xlu1 %857  ;;  %v830_v53 = vadd.f32 %v829_v48, %v828_v41  ;;  %v803_v0 = vadd.f32 %v802_v54, %v801_v50 }
 0x2af   : > { %v770_v26 = vadd.f32 %v769_v24, %v768_v22  ;;  %v786_v27 = vrot.slane %v785_v25, 2  ;;  %v859_v39 = vrot.slane %v858_v35, 4  ;;  %v846_v43 = vadd.f32 %v845_v38, %v844_v33  ;;  %v914_v38 = vld [vmem:[#allocation2 + $0x8] sm:$0xff] }
 0x2b0   : > { %v816_v52 = vadd.f32 %v815_v47, %v814_v40  ;;  %v831_v58 = vrot.slane %v830_v53, 1 }
 0x2b1   : > { %1479 = vpush %v770_v26  ;;  %v787_v28 = vadd.f32 %v786_v27, %v785_v25  ;;  %v860_v44 = vadd.f32 %v859_v39, %v858_v35  ;;  %v847_v49 = vrot.slane %v846_v43, 2 }
 0x2b2   : > { %v817_v57 = vrot.slane %v816_v52, 1  ;;  %v832_v7 = vadd.f32 %v831_v58, %v830_v53 }
 0x2b3   : > { %v788_v29 = vrot.slane %v787_v28, 1  ;;  %v861_v51 = vrot.slane %v860_v44, 2  ;;  %v848_v55 = vadd.f32 %v847_v49, %v846_v43 }
 0x2b4   : > { %v818_v6 = vadd.f32 %v817_v57, %v816_v52 }
 0x2b5   : > { %v789_v30 = vadd.f32 %v788_v29, %v787_v28  ;;  %v862_v56 = vadd.f32 %v861_v51, %v860_v44  ;;  %v849_v1 = vrot.slane %v848_v55, 1  ;;  %v924_v51 = vld [vmem:[#allocation4] sm:$0xff] }
 0x2b7   : > { %1481 = vpush %v789_v30  ;;  %v863_v2 = vrot.slane %v862_v56, 1  ;;  %v850_v8 = vadd.f32 %v849_v1, %v848_v55 }
 0x2b9   : > { %v864_v9 = vadd.f32 %v863_v2, %v862_v56 }
 0x2de   : > { %s2732_s2 = spop %1477 }
 0x2df   : > { %s772_s24 = smax.f32 %s2164_s1, %s2732_s2 }
 0x2e0   : > { %v805_v45 = vstv %s772_s24 }
 0x2e2   : > { %s2735_s20 = spop %1479 }
 0x2e3   : > { %s773_s5 = smax.f32 %s2164_s1, %s2735_s20  ;;  %p774_p0 = scmp.gt.f32.partialorder %s2735_s20, 0.5 }
 0x2e4   : > { %v791_v46 = vstv %s773_s5  ;;  %p775_p8 = scmp.lt.f32.partialorder %s2735_s20, 1.5 }
 0x2e5   : > { %1691 = vrcp.f32 %v791_v46 }
 0x2e6   : > { %1693 = vrcp.f32 %v805_v45  ;;  %p2743_p3 = pnand %p775_p8, %p774_p0 }
 0x2e8   : > { %s1482_s22 = spop %1481 }
 0x2ef   : > { %v1692_v62 = vpop.eup %1691 }
 0x2f0   : > { %1483 = vpush %v1692_v62  ;;  %v1694_v4 = vpop.eup %1693 }
 0x2f1   : > { %1485 = vpush %v803_v0 }
 0x2f2   : > { %1487 = vpush %v1694_v4 }
 0x2f3   : > { %1489 = vpush %v818_v6  ;;  %v941_v6 = vlaneseq }
 0x2f4   : > { %1491 = vpush %v832_v7 }
 0x2f5   : > { %1493 = vpush %v850_v8  ;;  %v942_v7 = vand.u32 127, %v941_v6 }
 0x2f6   : > { %1495 = vpush %v864_v9 }
 0x2f7   : > { %vm943_vm5 = vcmp.eq.s32.totalorder %v942_v7, 0  ;;  %vm946_vm6 = vcmp.eq.s32.totalorder %v942_v7, 1  ;;  %vm949_vm7 = vcmp.eq.s32.totalorder %v942_v7, 2  ;;  %vm952_vm8 = vcmp.eq.s32.totalorder %v942_v7, 3 }
 0x321   : > { %s2740_s17 = spop %1483 }
 0x322   : > { %s794_s8 = smul.f32 %s2740_s17, %s1482_s22  ;;  %s1486_s19 = spop %1485 }
 0x323   : > { %s1488_s1 = spop %1487 }
 0x324   : > { %s808_s24 = smul.f32 %s1488_s1, %s1486_s19  ;;  %s1490_s5 = spop %1489 }
 0x325   : > { %s823_s30 = smul.f32 %s1490_s5, %s2740_s17  ;;  %s1492_s13 = spop %1491 }
 0x326   : > { %s837_s11 = smul.f32 %s1492_s13, %s1488_s1  ;;  %s1494_s10 = spop %1493 }
 0x327   : > { %s855_s3 = smul.f32 %s1494_s10, %s1488_s1  ;;  %s1496_s6 = spop %1495 }
 0x328   : > { %s3162_s11 = smov (!%p2743_p3, %s837_s11), %s823_s30  ;;  %s869_s22 = smul.f32 %s1496_s6, %s1488_s1 }
 0x329   : > { %v870_v10 = vstv %s855_s3  ;;  %s3164_s24 = smov (!%p2743_p3, %s808_s24), %s794_s8  ;;  %s897_s10 = smul.f32 10.0, %s855_s3  ;;  %v915_v39 = vstv %s3162_s11 }
 0x32a   : > { %v871_v11 = vsub.f32 %v2722_v3, %v870_v10  ;;  %v883_v12 = vstv %s869_s22  ;;  %s902_s13 = smul.f32 10.0, %s869_s22  ;;  %v908_v37 = vstv %s3164_s24  ;;  %v916_v41 = vsub.f32 %v914_v38, %v915_v39  ;;  %s3117_s11 = scalar_lea.vmem [#allocation19], %s2666_s15 }
 0x32b   : > { %v884_v14 = vsub.f32 %v2726_v5, %v883_v12  ;;  %v898_v18 = vstv %s897_s10  ;;  %v909_v40 = vsub.f32 %v907_v36, %v908_v37  ;;  %v950_v10 = vstv %s2732_s2  ;;  %s3118_s1 = scalar_lea.vmem [#allocation23], %s2663_s9 }
 0x32c   : > { %v872_v13 = vmul.f32 %v871_v11, %v871_v11  ;;  %v903_v19 = vstv %s902_s13  ;;  %v899_v21 = vmul.f32 1.442695, %v898_v18  ;;  %v917_v44 = vmul.f32 %v916_v41, %v916_v41 }
 0x32d   : > { %v885_v16 = vmul.f32 %v884_v14, %v884_v14  ;;  %v904_v22 = vmul.f32 1.442695, %v903_v19  ;;  %v910_v42 = vmul.f32 %v909_v40, %v909_v40  ;;  %v953_v12 = vstv %s2735_s20 }
 0x32e   : > { %v873_v15 = vmul.f32 %v2703_v60, %v872_v13  ;;  %1695 = vpow2.f32 %v899_v21 }
 0x32f   : > { %v886_v17 = vmul.f32 %v2703_v60, %v885_v16  ;;  %1697 = vpow2.f32 %v904_v22  ;;  %v1456_v16 = vld [vmem:[%s2656_s0 + $0x8] sm:$0xff] (!%p1455_p4) }
 0x330   : > { %874 = vadd.xlane.f32.xlu0 %v873_v15  ;;  %v960_v15 = vld [vmem:[%s2656_s0] sm:$0xff] (!%p1455_p4)  ;;  %v978_v18 = vsub.f32 (!%p1455_p4), %v2705_v61, %v1456_v16 }
 0x331   : > { %887 = vadd.xlane.f32.xlu1 %v886_v17  ;;  %v961_v17 = vsub.f32 (!%p1455_p4), %v2701_v59, %v960_v15 }
 0x333   : > { %v962_v19 = vmul.f32 (!%p1455_p4), %v961_v17, %v2711_v63 }
 0x338   : > { %v1696_v34 = vpop.eup %1695 }
 0x339   : > { %v1698_v35 = vpop.eup %1697 }
 0x3bd   : > { %v875_v3 = vpop.xlane.xlu0 %874 }
 0x3be   : > { %v876_v20 = vrot.slane %v875_v3, 4  ;;  %v888_v24 = vpop.xlane.xlu1 %887 }
 0x3bf   : > { %v889_v25 = vrot.slane %v888_v24, 4 }
 0x3c0   : > { %v877_v23 = vadd.f32 %v876_v20, %v875_v3  ;;  %v979_v3 = vmul.f32 (!%p1455_p4), %v978_v18, %v2711_v63 }
 0x3c1   : > { %v890_v5 = vadd.f32 %v889_v25, %v888_v24 }
 0x3c2   : > { %v878_v26 = vrot.slane %v877_v23, 2 }
 0x3c3   : > { %v891_v28 = vrot.slane %v890_v5, 2 }
 0x3c4   : > { %v879_v27 = vadd.f32 %v878_v26, %v877_v23 }
 0x3c5   : > { %v892_v30 = vadd.f32 %v891_v28, %v890_v5 }
 0x3c6   : > { %v880_v29 = vrot.slane %v879_v27, 1 }
 0x3c7   : > { %v893_v32 = vrot.slane %v892_v30, 1 }
 0x3c8   : > { %v881_v31 = vadd.f32 %v880_v29, %v879_v27 }
 0x3c9   : > { %v894_v33 = vadd.f32 %v893_v32, %v892_v30  ;;  %v993_v30 = vld [vmem:[#allocation5] sm:$0xff] (!%p1455_p4) }
 0x3ca   : > { %1497 = vpush %v881_v31 }
 0x3cb   : > { %1499 = vpush %v894_v33  ;;  %v999_v33 = vld [vmem:[#allocation5 + $0x8] sm:$0xff] (!%p1455_p4) }
 0x3cc   : > { %1501 = vpush %v1696_v34 }
 0x3cd   : > { %1503 = vpush %v1698_v35 }
 0x3fb   : > { %s2762_s3 = spop %1497 }
 0x3fc   : > { %s2764_s6 = spop %1499 }
 0x3fd   : > { %s896_s30 = sadd.f32 %s2764_s6, %s2762_s3  ;;  %s2768_s8 = spop %1501 }
 0x3fe   : > { %v911_v43 = vstv %s2768_s8  ;;  %s2771_s19 = spop %1503 }
 0x3ff   : > { %v912_v45 = vmul.f32 %v911_v43, %v910_v42  ;;  %v918_v46 = vstv %s2771_s19  ;;  %v944_v8 = vstv %s896_s30 }
 0x400   : > { %v919_v47 = vmul.f32 %v918_v46, %v917_v44 }
 0x402   : > { %v920_v48 = vadd.f32 %v919_v47, %v912_v45 }
 0x404   : > { %v921_v49 = vsub.f32 0.0, %v920_v48 }
 0x406   : > { %v922_v50 = vmul.f32 1.442695, %v921_v49 }
 0x408   : > { %1699 = vpow2.f32 %v922_v50 }
 0x412   : > { %v1700_v52 = vpop.eup %1699 }
 0x413   : > { %v937_v53 = vpack.c.bf16 %v1700_v52, %v1700_v52  ;;  %v925_v54 = vsub.f32 %v924_v51, %v1700_v52 }
 0x415   : > { %938 = vst [vmem:[%s3117_s11] sm:$0xf] %v937_v53  ;;  %v926_v55 = vmul.f32 %v925_v54, %v925_v54 }
 0x417   : > { %v927_v56 = vmul.f32 %v2703_v60, %v926_v55  ;;  %v945_v60 = vsel %vm943_vm5, %v944_v8, 0.0 }
 0x419   : > { %928 = vadd.xlane.f32.xlu0 %v927_v56 }
 0x41d   : > { %963 = vadd.xlane.f32.xlu0 (!%p1455_p4), %v962_v19 }
 0x421   : > { %980 = vadd.xlane.f32.xlu0 (!%p1455_p4), %v979_v3 }
 0x4a6   : > { %v929_v57 = vpop.xlane.xlu0 %928 }
 0x4a7   : > { %v930_v58 = vrot.slane %v929_v57, 4 }
 0x4a9   : > { %v931_v62 = vadd.f32 %v930_v58, %v929_v57 }
 0x4aa   : > { %v964_v20 = vpop.xlane.xlu0 (!%p1455_p4), %963 }
 0x4ab   : > { %v932_v0 = vrot.slane %v931_v62, 2  ;;  %v965_v21 = vrot.slane (!%p1455_p4), %v964_v20, 4 }
 0x4ad   : > { %v933_v1 = vadd.f32 %v932_v0, %v931_v62  ;;  %v966_v22 = vadd.f32 (!%p1455_p4), %v965_v21, %v964_v20 }
 0x4ae   : > { %v981_v23 = vpop.xlane.xlu0 (!%p1455_p4), %980 }
 0x4af   : > { %v934_v2 = vrot.slane %v933_v1, 1  ;;  %v967_v24 = vrot.slane (!%p1455_p4), %v966_v22, 2  ;;  %v982_v25 = vrot.slane (!%p1455_p4), %v981_v23, 4 }
 0x4b1   : > { %v935_v4 = vadd.f32 %v934_v2, %v933_v1  ;;  %v983_v26 = vadd.f32 (!%p1455_p4), %v982_v25, %v981_v23  ;;  %v968_v5 = vadd.f32 (!%p1455_p4), %v967_v24, %v966_v22 }
 0x4b3   : > { %1505 = vpush %v935_v4  ;;  %v984_v27 = vrot.slane (!%p1455_p4), %v983_v26, 2  ;;  %v969_v59 = vrot.slane (!%p1455_p4), %v968_v5, 1 }
 0x4b5   : > { %v985_v28 = vadd.f32 (!%p1455_p4), %v984_v27, %v983_v26  ;;  %v970_v61 = vadd.f32 (!%p1455_p4), %v969_v59, %v968_v5 }
 0x4b7   : > { %1507 = vpush (!%p1455_p4), %v970_v61  ;;  %v986_v29 = vrot.slane (!%p1455_p4), %v985_v28, 1 }
 0x4b9   : > { %v987_v63 = vadd.f32 (!%p1455_p4), %v986_v29, %v985_v28 }
 0x4bb   : > { %1509 = vpush (!%p1455_p4), %v987_v63 }
 0x4e3   : > { %959 = sbr.rel (%p1455_p4) target bundleno = 1290 (0x50a), region = 80 }
 0x4e4   : > { %s1506_s27 = spop %1505 }
 0x4e5   : > { %v947_v9 = vstv %s1506_s27 }
 0x4e6   : > { %v948_v11 = vsel %vm946_vm6, %v947_v9, %v945_v60 }
 0x4e7   : > { %v951_v13 = vsel %vm949_vm7, %v950_v10, %v948_v11 }
 0x4e8   : > { %v954_v14 = vsel %vm952_vm8, %v953_v12, %v951_v13  ;;  %s1508_s0 = spop (!%p1455_p4), %1507 }
 0x4e9   : > { %955 = vst [vmem:[%s3118_s1] sm:$0x1] %v954_v14  ;;  %s975_s4 = smul.f32 (!%p1455_p4), %s1508_s0, %s2740_s17 }
 0x4eb   : > { %v994_v31 = vstv %s975_s4 }
 0x4ec   : > { %v995_v32 = vsub.f32 %v993_v30, %v994_v31  ;;  %s1510_s2 = spop %1509 }
 0x4ed   : > { %s992_s20 = smul.f32 %s1510_s2, %s2740_s17 }
 0x4ee   : > { %v996_v35 = vmul.f32 %v995_v32, %v995_v32 }
 0x4ef   : > { %v1000_v34 = vstv %s992_s20 }
 0x4f0   : > { %v1001_v36 = vsub.f32 %v999_v33, %v1000_v34  ;;  %v997_v38 = vmul.f32 %v996_v35, %v911_v43 }
 0x4f2   : > { %v1002_v37 = vmul.f32 %v1001_v36, %v1001_v36 }
 0x4f4   : > { %v1003_v39 = vmul.f32 %v1002_v37, %v918_v46 }
 0x4f6   : > { %v1004_v40 = vadd.f32 %v1003_v39, %v997_v38 }
 0x4f8   : > { %v1005_v41 = vsub.f32 0.0, %v1004_v40 }
 0x4fa   : > { %v1006_v42 = vmul.f32 1.442695, %v1005_v41 }
 0x4fc   : > { %1701 = vpow2.f32 %v1006_v42 }
 0x506   : > { %v1702_v44 = vpop.eup %1701 }
 0x507   : > { %v1008_v45 = vpack.c.bf16 %v1702_v44, %v1702_v44 }
 0x509   : > { %1009 = vst [vmem:[%s2679_s28] sm:$0xf] %v1008_v45 }
 0x50a PF: > { %1013 = sbr.rel (%p647_p10) target bundleno = 1297 (0x511), region = 84  ;;  %v2165_v47 = vmov (!%p647_p10), 0  }
 0x50b   : > { %1014 = vst [vmem:[%s2679_s28] sm:$0xf] (!%p647_p10), %v2165_v47 }
 0x511 PF: > { %s2806_s17 = sshll.u32 %s2696_s18, 6  ;;  %s3120_s10 = sld [smem:[#allocation57_spill]] }
 0x512   : > { %s1064_s3 = sshll.u32 %s2679_s28, 4  ;;  %s1021_s6 = scalar_lea.sflag [#allocation21], %s2631_s12  ;;  %s1065_s3 = int_to_ptr.vmem [resolvable:$true] %s1064_s3 }
 0x513   : > { %s1891_s30 = scalar_lea.vmem %s1065_s3, 64  ;;  %p3121_p1 = scmp.ne.s32.totalorder %s3085_s7, 0 }
 0x514   : > { %p1892_p2 = scmp.ne.s32.totalorder %s1065_s3, %s1891_s30  ;;  %s2166_s8 = smov [#allocation20]  }
 0x515   : > { %s1895_s19 = sshll.u32 %s2166_s8, 4  ;;  %s1896_s19 = int_to_ptr.vmem [resolvable:$false] %s1895_s19 }
 0x516   : > { %p1893_p13 = pnand %p1892_p2, %p3121_p1  ;;  %s1897_s11 = scalar_lea.vmem %s1896_s19, 128 }
 0x517   : > { %s2812_s13 = scalar_lea.hbm %s3120_s10, %s2806_s17  ;;  %p1898_p9 = scmp.lt.s32.totalorder %s1065_s3, %s1896_s19 }
 0x518   : > { %p1894_p7 = pneg %p1893_p13  ;;  %p1899_p5 = scmp.lt.s32.totalorder %s1897_s11, %s1891_s30 }
 0x51a   : > { %p1900_p11 = por %p1899_p5, %p1898_p9 }
 0x51c   : > { %p1901_p12 = pnand %p1900_p11, %p1894_p7 }
 0x51e   : > { %1904 = shalt.err (!%p1901_p12)
}
 0x51f   : > { %s1905_s28 = scalar_lea.hbm %s2812_s13, 64  ;;  %s1909_s0 = scalar_lea.hbm %s3120_s10, 384 }
 0x520   : > { %p1906_p10 = scmp.ne.s32.totalorder %s2812_s13, %s1905_s28  ;;  %p1910_p8 = scmp.lt.u32.totalorder %s2812_s13, %s3120_s10 }
 0x521   : > { %p1911_p3 = scmp.lt.u32.totalorder %s1909_s0, %s1905_s28  ;;  %p1913_p2 = scmp.lt.u32.totalorder %s1905_s28, %s2812_s13 }
 0x522   : > { %p1907_p6 = pnand %p1906_p10, %p3121_p1 }
 0x523   : > { %p1912_p4 = por %p1911_p3, %p1910_p8 }
 0x524   : > { %p1908_p0 = pneg %p1907_p6 }
 0x525   : > { %p1914_p13 = por %p1913_p2, %p1912_p4 }
 0x527   : > { %p1915_p7 = pnand %p1914_p13, %p1908_p0 }
 0x529   : > { %1918 = shalt.err (!%p1915_p7)
}
 0x52a   : > { %1526 = dma.vmem_to_hbm [thread:$0]  (%p3121_p1), %s1065_s3, 64, %s2812_s13, %s1021_s6  }
 0x52b   : > { %s1464_s20 = sshll.u32 %s2696_s18, 4  ;;  %s3122_s24 = scalar_lea.vmem [#allocation23], %s2663_s9 }
 0x52c   : > { %s1094_s5 = sshll.u32 %s3122_s24, 4  ;;  %s3123_s8 = sld [smem:[#allocation59_spill]]  ;;  %s1095_s5 = int_to_ptr.vmem [resolvable:$true] %s1094_s5 }
 0x52d   : > { %s1031_s11 = scalar_lea.sflag [#allocation24], %s2631_s12  ;;  %s1919_s28 = scalar_lea.vmem %s1095_s5, 16 }
 0x52e   : > { %p1920_p9 = scmp.ne.s32.totalorder %s1095_s5, %s1919_s28  ;;  %s2167_s27 = smov [#allocation23]  }
 0x52f   : > { %s1923_s1 = sshll.u32 %s2167_s27, 4  ;;  %s1924_s1 = int_to_ptr.vmem [resolvable:$false] %s1923_s1 }
 0x530   : > { %p1921_p5 = pnand %p1920_p9, %p3121_p1  ;;  %s1925_s0 = scalar_lea.vmem %s1924_s1, 32 }
 0x531   : > { %p1926_p12 = scmp.lt.s32.totalorder %s1095_s5, %s1924_s1  ;;  %p1927_p10 = scmp.lt.s32.totalorder %s1925_s0, %s1919_s28 }
 0x532   : > { %s2841_s19 = scalar_lea.hbm %s3123_s8, %s1464_s20  ;;  %p1922_p11 = pneg %p1921_p5 }
 0x533   : > { %p1928_p6 = por %p1927_p10, %p1926_p12 }
 0x535   : > { %p1929_p0 = pnand %p1928_p6, %p1922_p11 }
 0x537   : > { %1932 = shalt.err (!%p1929_p0)
}
 0x538   : > { %s1933_s18 = scalar_lea.hbm %s2841_s19, 16  ;;  %s1937_s4 = scalar_lea.hbm %s3123_s8, 96 }
 0x539   : > { %p1934_p8 = scmp.ne.s32.totalorder %s2841_s19, %s1933_s18  ;;  %p1938_p2 = scmp.lt.u32.totalorder %s2841_s19, %s3123_s8 }
 0x53a   : > { %p1939_p13 = scmp.lt.u32.totalorder %s1937_s4, %s1933_s18  ;;  %p1941_p9 = scmp.lt.u32.totalorder %s1933_s18, %s2841_s19 }
 0x53b   : > { %p1935_p3 = pnand %p1934_p8, %p3121_p1 }
 0x53c   : > { %p1940_p7 = por %p1939_p13, %p1938_p2 }
 0x53d   : > { %p1936_p4 = pneg %p1935_p3 }
 0x53e   : > { %p1942_p5 = por %p1941_p9, %p1940_p7 }
 0x540   : > { %p1943_p11 = pnand %p1942_p5, %p1936_p4 }
 0x542   : > { %1946 = shalt.err (!%p1943_p11)
}
 0x543   : > { %1528 = dma.vmem_to_hbm [thread:$0]  (%p3121_p1), %s1095_s5, 16, %s2841_s19, %s1031_s11  }
 0x544   : > { %s3124_s30 = sld [smem:[#allocation56_spill]]  ;;  %s3125_s27 = scalar_lea.vmem [#allocation19], %s2666_s15 }
 0x545   : > { %s1049_s1 = sshll.u32 %s3125_s27, 4  ;;  %s3126_s13 = sld [smem:[#allocation58_spill]]  ;;  %s2877_s1 = int_to_ptr.vmem [resolvable:$true] %s1049_s1 }
 0x546   : > { %s3128_s2 = scalar_lea.vmem [#allocation22], %s2666_s15  ;;  %s1016_s5 = scalar_lea.sflag [#allocation10], %s2663_s9 }
 0x547   : > { %s2881_s20 = sshll.u32 %s3128_s2, 4  ;;  %s1947_s19 = scalar_lea.vmem %s2877_s1, 64  ;;  %s1080_s20 = int_to_ptr.vmem [resolvable:$true] %s2881_s20 }
 0x548   : > { %p1948_p12 = scmp.ne.s32.totalorder %s2877_s1, %s1947_s19  ;;  %s2168_s24 = smov [#allocation19]  }
 0x549   : > { %s1951_s22 = sshll.u32 %s2168_s24, 4  ;;  %s1952_s22 = int_to_ptr.vmem [resolvable:$false] %s1951_s22 }
 0x54a   : > { %s2867_s28 = scalar_lea.hbm %s3124_s30, %s2806_s17  ;;  %p1949_p10 = pnand %p1948_p12, %p3121_p1 }
 0x54b   : > { %s3127_s3 = smov %s3126_s13  ;;  %s2875_s4 = scalar_lea.hbm %s3126_s13, %s2806_s17 }
 0x54c   : > { %p1950_p6 = pneg %p1949_p10  ;;  %s1953_s27 = scalar_lea.vmem %s1952_s22, 128 }
 0x54d   : > { %p1954_p0 = scmp.lt.s32.totalorder %s2877_s1, %s1952_s22  ;;  %p1955_p8 = scmp.lt.s32.totalorder %s1953_s27, %s1947_s19 }
 0x54f   : > { %p1956_p3 = por %p1955_p8, %p1954_p0 }
 0x551   : > { %p1957_p4 = pnand %p1956_p3, %p1950_p6 }
 0x553   : > { %1960 = shalt.err (!%p1957_p4)
}
 0x554   : > { %s1961_s9 = scalar_lea.hbm %s2867_s28, 64  ;;  %s1965_s0 = scalar_lea.hbm %s3124_s30, 384 }
 0x555   : > { %p1962_p2 = scmp.ne.s32.totalorder %s2867_s28, %s1961_s9  ;;  %p1966_p9 = scmp.lt.u32.totalorder %s2867_s28, %s3124_s30 }
 0x556   : > { %p1967_p5 = scmp.lt.u32.totalorder %s1965_s0, %s1961_s9  ;;  %p1969_p12 = scmp.lt.u32.totalorder %s1961_s9, %s2867_s28 }
 0x557   : > { %p1963_p13 = pnand %p1962_p2, %p3121_p1 }
 0x558   : > { %p1968_p11 = por %p1967_p5, %p1966_p9 }
 0x559   : > { %p1964_p7 = pneg %p1963_p13 }
 0x55a   : > { %p1970_p10 = por %p1969_p12, %p1968_p11 }
 0x55c   : > { %p1971_p6 = pnand %p1970_p10, %p1964_p7 }
 0x55e   : > { %1974 = shalt.err (!%p1971_p6)
}
 0x55f   : > { %s3129_s2 = sld [smem:[#allocation39_spill]]  ;;  %s1975_s24 = scalar_lea.vmem %s1080_s20, 64 }
 0x560   : > { %1525 = dma.vmem_to_hbm [thread:$0]  (%p3121_p1), %s2877_s1, 64, %s2867_s28, %s1016_s5  }
 0x561   : > { %p1976_p0 = scmp.ne.s32.totalorder %s1080_s20, %s1975_s24  ;;  %s2169_s22 = smov [#allocation22]  }
 0x562   : > { %s1979_s27 = sshll.u32 %s2169_s22, 4  ;;  %s1980_s27 = int_to_ptr.vmem [resolvable:$false] %s1979_s27 }
 0x563   : > { %p1977_p8 = pnand %p1976_p0, %p3121_p1  ;;  %s1981_s9 = scalar_lea.vmem %s1980_s27, 128 }
 0x564   : > { %p1982_p4 = scmp.lt.s32.totalorder %s1080_s20, %s1980_s27  ;;  %p1983_p2 = scmp.lt.s32.totalorder %s1981_s9, %s1975_s24 }
 0x565   : > { %s1465_s19 = sshll.u32 %s3129_s2, 4  ;;  %p1978_p3 = pneg %p1977_p8 }
 0x566   : > { %p1984_p13 = por %p1983_p2, %p1982_p4 }
 0x568   : > { %p1985_p7 = pnand %p1984_p13, %p1978_p3 }
 0x56a   : > { %1988 = shalt.err (!%p1985_p7)
}
 0x56b   : > { %s1989_s28 = scalar_lea.hbm %s2875_s4, 64  ;;  %s1993_s15 = scalar_lea.hbm %s3127_s3, 384 }
 0x56c   : > { %p1990_p9 = scmp.ne.s32.totalorder %s2875_s4, %s1989_s28  ;;  %p1994_p12 = scmp.lt.u32.totalorder %s2875_s4, %s3127_s3 }
 0x56d   : > { %p1995_p10 = scmp.lt.u32.totalorder %s1993_s15, %s1989_s28  ;;  %p1997_p0 = scmp.lt.u32.totalorder %s1989_s28, %s2875_s4 }
 0x56e   : > { %p1991_p5 = pnand %p1990_p9, %p3121_p1 }
 0x56f   : > { %p1996_p6 = por %p1995_p10, %p1994_p12 }
 0x570   : > { %p1992_p11 = pneg %p1991_p5 }
 0x571   : > { %p1998_p8 = por %p1997_p0, %p1996_p6 }
 0x573   : > { %p1999_p3 = pnand %p1998_p8, %p1992_p11 }
 0x575   : > { %2002 = shalt.err (!%p1999_p3)
}
 0x576   : > { %1527 = dma.vmem_to_hbm [thread:$0]  (%p3121_p1), %s1080_s20, 64, %s2875_s4, %s1021_s6  }
 0x577   : > { %s3130_s2 = sld [smem:[#allocation60_spill]]  ;;  %s3131_s22 = scalar_lea.vmem [#allocation25], %s2634_s26 }
 0x578   : > { %s1107_s27 = sshll.u32 %s3131_s22, 4  ;;  %p3132_p2 = scmp.ne.s32.totalorder %s3087_s23, 0  ;;  %s1108_s27 = int_to_ptr.vmem [resolvable:$true] %s1107_s27 }
 0x579   : > { %s2003_s9 = scalar_lea.vmem %s1108_s27, 16  ;;  %s2170_s7 = smov [#allocation25]  }
 0x57a   : > { %p2004_p4 = scmp.ne.s32.totalorder %s1108_s27, %s2003_s9  ;;  %s2007_s28 = sshll.u32 %s2170_s7, 4  ;;  %s2008_s28 = int_to_ptr.vmem [resolvable:$false] %s2007_s28 }
 0x57b   : > { %s2009_s1 = scalar_lea.vmem %s2008_s28, 32  ;;  %p2010_p9 = scmp.lt.s32.totalorder %s1108_s27, %s2008_s28 }
 0x57c   : > { %p2005_p13 = pnand %p2004_p4, %p3132_p2  ;;  %p2011_p5 = scmp.lt.s32.totalorder %s2009_s1, %s2003_s9 }
 0x57d   : > { %s2929_s24 = scalar_lea.hbm %s3130_s2, %s1465_s19 }
 0x57e   : > { %p2006_p7 = pneg %p2005_p13  ;;  %p2012_p1 = por %p2011_p5, %p2010_p9 }
 0x580   : > { %p2013_p11 = pnand %p2012_p1, %p2006_p7 }
 0x582   : > { %2016 = shalt.err (!%p2013_p11)
}
 0x583   : > { %s2017_s26 = scalar_lea.hbm %s2929_s24, 16  ;;  %s2021_s20 = scalar_lea.hbm %s3130_s2, 32 }
 0x584   : > { %p2018_p12 = scmp.ne.s32.totalorder %s2929_s24, %s2017_s26  ;;  %p2022_p0 = scmp.lt.u32.totalorder %s2929_s24, %s3130_s2 }
 0x585   : > { %p2023_p8 = scmp.lt.u32.totalorder %s2021_s20, %s2017_s26  ;;  %p2025_p4 = scmp.lt.u32.totalorder %s2017_s26, %s2929_s24 }
 0x586   : > { %p2019_p10 = pnand %p2018_p12, %p3132_p2 }
 0x587   : > { %p2024_p3 = por %p2023_p8, %p2022_p0 }
 0x588   : > { %p2020_p6 = pneg %p2019_p10 }
 0x589   : > { %p2026_p13 = por %p2025_p4, %p2024_p3 }
 0x58b   : > { %p2027_p7 = pnand %p2026_p13, %p2020_p6 }
 0x58d   : > { %2030 = shalt.err (!%p2027_p7)
}
 0x58e   : > { %1529 = dma.vmem_to_hbm [thread:$0]  (%p3132_p2), %s1108_s27, 16, %s2929_s24, %s1031_s11  }
 0x58f PF: > { %s3133_s15 = sld [smem:[#allocation41_spill]]  ;;  %s3134_s17 = sld [smem:[#allocation35_spill]] }
 0x590   : > { %s3135_s0 = sld [smem:[#allocation47_spill]] }
 0x595   : > { %p1574_p9 = scmp.ge.s32.totalorder %s3133_s15, 2  ;;  %s1119_s18 = sand.u32 1, %s3134_s17  }
 0x596   : > { %p3136_p5 = scmp.ne.s32.totalorder %s3135_s0, 0  ;;  %s1120_s13 = scalar_lea.sflag [#allocation10], %s1119_s18 }
 0x598   : > { %p1556_p1 = pnand %p1574_p9, %p3136_p5 }
 0x59a   : > { %2094 = dma.done.wait (!%p1556_p1), %s1120_s13, 64  }
 0x59b   : > { %2096 = vsyncadd (!%p1556_p1), %s1120_s13, 4294967232  ;;  %s3137_s22 = sadd.s32 4294967294, %s3133_s15  }
 0x59c   : > { %s1128_s23 = sand.u32 1, %s3137_s22  }
 0x59d   : > { %s1129_s9 = scalar_lea.sflag [#allocation21], %s1128_s23 }
 0x59e   : > { %2098 = dma.done.wait (!%p1556_p1), %s1129_s9, 128  }
 0x59f   : > { %2100 = vsyncadd (!%p1556_p1), %s1129_s9, 4294967168  ;;  %s1147_s12 = scalar_lea.sflag [#allocation24], %s1128_s23 }
 0x5a0   : > { %2102 = dma.done.wait (!%p1556_p1), %s1147_s12, 16  }
 0x5a1   : > { %2104 = vsyncadd (!%p1556_p1), %s1147_s12, 4294967280  ;;  %s3138_s11 = sld [smem:[#allocation48_spill]] }
 0x5a7   : > { %p3139_p2 = scmp.ne.s32.totalorder %s3138_s11, 0 }
 0x5a9   : > { %p1568_p11 = pnand %p1574_p9, %p3139_p2 }
 0x5ab   : > { %2106 = dma.done.wait (!%p1568_p11), %s1147_s12, 16  }
 0x5ac   : > { %2108 = vsyncadd (!%p1568_p11), %s1147_s12, 4294967280  ;;  %s46_s22 = sadd.s32 1, %s3133_s15   ;;  %s3140_s24 = sld [smem:[#allocation36_spill]] }
 0x5ad   : > { %p43_p12 = scmp.ge.s32.totalorder %s46_s22, 8   ;;  %s3141_s0 = sld [smem:[#allocation46_spill]] }
 0x5ae   : > { %s3142_s27 = sld [smem:[#allocation37_spill]]  ;;  %s3143_s17 = sld [smem:[#allocation43_spill]] }
 0x5af   : > { %s3144_s18 = sld [smem:[#allocation40_spill]]  ;;  %s3145_s20 = sld [smem:[#allocation45_spill]] }
 0x5b0   : > { %s3146_s7 = sld [smem:[#allocation42_spill]]  ;;  %s3147_s13 = smov %s2115_s14 }
 0x5b1   : > { %s3149_s15 = smov %s2127_s16  ;;  %s3151_s19 = smov %s2147_s21 }
 0x5b2   : > { %s3148_s14 = smov %s3140_s24  ;;  %45 = sbr.rel (!%p43_p12) target bundleno = 37 (0x25), region = 230 }
 0x5b4   : > { %s3150_s16 = smov %s3142_s27 }
 0x5b6   : > { %s3152_s21 = smov %s3146_s7 }
 0x5b9   :  { %1159 = vsyncpa [#allocation9], 1 }
 0x5ba   :  { %1161 = vsyncpa [#allocation9 + $0x1], 1 }
 0x5bb   :  { %1162 = vsyncpa [#allocation12], 1 }
 0x5bc   :  { %1164 = vsyncpa [#allocation12 + $0x1], 1 }
 0x5bd   :  { %1165 = vsyncpa [#allocation15], 1 }
 0x5be   :  { %1167 = vsyncpa [#allocation15 + $0x1], 1 }
 0x5bf   :  { %1168 = vsyncpa [#allocation18], 1 }
 0x5c0   :  { %1170 = vsyncpa [#allocation18 + $0x1], 1 }
 0x5c1   :  { %1171 = vsyncpa [#allocation10], 1 }
 0x5c2   :  { %1173 = vsyncpa [#allocation10 + $0x1], 1 }
 0x5c3   :  { %1174 = vsyncpa [#allocation21], 1 }
 0x5c4   :  { %1176 = vsyncpa [#allocation21 + $0x1], 1 }
 0x5c5   :  { %1177 = vsyncpa [#allocation24], 1 }
 0x5c6   :  { %1179 = vsyncpa [#allocation24 + $0x1], 1 }

</bundles_post_ra>
